<compile_context>
chip_gen: v7x
topology: tpu7x:2x2x1
jax: 0.10.0
libtpu: 0.0.40
codegen_flags: <defaults>
</compile_context>

<pallas_src>
import math

import jax
import jax.numpy as jnp
from jax.experimental import pallas as pl
from jax.experimental.pallas import tpu as pltpu

# Small-but-consistent shapes (module hardcodes d_model=512, h=8; scaled down).
D_MODEL = 128
H = 4
BATCH = 2
SEQ = 8
BS = BATCH * SEQ            # flattened (batch*seq) rows -> sublane/M axis
HD = H * D_MODEL            # concatenated head width
LN_EPS = 1e-5
NEG_INF = -1e30


def _layernorm(x, gamma, beta):
    # Single-pass: the two cross-lane reductions are independent (overlap on XLU).
    inv_d = 1.0 / x.shape[-1]
    s1 = jnp.sum(x, axis=-1, keepdims=True)
    s2 = jnp.sum(x * x, axis=-1, keepdims=True)
    mean = s1 * inv_d
    var = s2 * inv_d - mean * mean              # biased variance, like torch
    return (x - mean) * jax.lax.rsqrt(var + LN_EPS) * gamma + beta


def encoder_kernel(x_ref, mask_ref,
                   wqkv_ref, bqkv_ref, wo_ref, bo_ref,
                   g1_ref, be1_ref,
                   w1_ref, b1_ref, w2_ref, b2_ref,
                   g2_ref, be2_ref,
                   out_ref,
                   o_scratch):
    x = x_ref[...]                                           # (BS, D) f32
    mask = mask_ref[...]                                     # (BS, BS) additive bias

    # ---- fused QKV projection: one (BS,D)@(D,3*H*D) bf16 matmul ----
    # 1/sqrt(d_model) is already folded into Wq / bq by the wrapper.
    qkv = jnp.dot(x.astype(jnp.bfloat16), wqkv_ref[...],
                  preferred_element_type=jnp.float32) + bqkv_ref[...]
    qkvb = qkv.astype(jnp.bfloat16)                          # (BS, 3*H*D)

    # ---- per-head fused attention: scores -> mask -> softmax -> P@V ----
    # Head slices are lane-aligned 128-wide column blocks (whole vregs, no copy);
    # results go straight into a head-contiguous bf16 scratch (no concatenates).
    # TODO(synk): at larger BATCH, switch to an (H*B)-batched dot_general over
    #             (S,D) tiles so no masked cross-batch work exists at all.
    for head in range(H):                                    # static unroll, H small
        lo = head * D_MODEL
        qh = qkvb[:, lo:lo + D_MODEL]                        # (BS, D) bf16
        kh = qkvb[:, HD + lo:HD + lo + D_MODEL]
        vh = qkvb[:, 2 * HD + lo:2 * HD + lo + D_MODEL]

        s = jax.lax.dot_general(                             # contract D on both
            qh, kh, (((1,), (1,)), ((), ())),
            preferred_element_type=jnp.float32)              # (BS, BS) f32
        s = s + mask                                         # hoisted cross-batch bias

        m = jnp.max(s, axis=-1, keepdims=True)
        e = jnp.exp(s - m)
        inv_l = pl.reciprocal(jnp.sum(e, axis=-1, keepdims=True), approx=True)
        p = (e * inv_l).astype(jnp.bfloat16)                 # (BS, BS)

        oh = jnp.dot(p, vh, preferred_element_type=jnp.float32)   # (BS, D)
        o_scratch[:, lo:lo + D_MODEL] = oh.astype(jnp.bfloat16)   # lane-aligned store

    # ---- ONE fused (BS,H*D)@(H*D,D) output projection ----
    attn = jnp.dot(o_scratch[...], wo_ref[...],
                   preferred_element_type=jnp.float32) + bo_ref[...]

    # ---- Add & Norm 1 (f32; residual uses the un-rounded f32 x) ----
    y1 = _layernorm(x + attn, g1_ref[...], be1_ref[...])

    # ---- Feed-forward: bf16 matmuls, f32 accumulation / bias / ReLU ----
    hdn = jnp.maximum(
        jnp.dot(y1.astype(jnp.bfloat16), w1_ref[...],
                preferred_element_type=jnp.float32) + b1_ref[...], 0.0)
    ff = jnp.dot(hdn.astype(jnp.bfloat16), w2_ref[...],
                 preferred_element_type=jnp.float32) + b2_ref[...]

    # ---- Add & Norm 2 ----
    out_ref[...] = _layernorm(y1 + ff, g2_ref[...], be2_ref[...])


def _cost_estimate():
    # Matmul FLOPs (2*M*K*N each).
    flops = (2 * BS * D_MODEL * 3 * HD          # fused QKV
             + H * 2 * BS * BS * D_MODEL        # Q@K^T per head
             + H * 2 * BS * BS * D_MODEL        # P@V per head
             + 2 * BS * HD * D_MODEL            # output projection
             + 2 * BS * D_MODEL * 4 * D_MODEL   # FF1
             + 2 * BS * 4 * D_MODEL * D_MODEL)  # FF2
    transcendentals = H * BS * BS + H * BS + 2 * BS   # exp + recip + rsqrt
    bytes_accessed = (2 * BS * D_MODEL * 4            # x in / out f32
                      + BS * BS * 4                   # mask bias
                      + (D_MODEL * 3 * HD + HD * D_MODEL
                         + D_MODEL * 4 * D_MODEL + 4 * D_MODEL * D_MODEL) * 2  # bf16 W
                      + (3 * HD + D_MODEL + 4 * D_MODEL + D_MODEL + 4 * D_MODEL) * 4)
    return pl.CostEstimate(flops=int(flops),
                           transcendentals=int(transcendentals),
                           bytes_accessed=int(bytes_accessed))


def encoder_forward(x, mask_bias, kernel_params):
    B, S, D = x.shape
    x_flat = x.reshape(B * S, D)                 # batch folded into sublane axis
    out_flat = pl.pallas_call(
        encoder_kernel,
        out_shape=jax.ShapeDtypeStruct((B * S, D), jnp.float32),
        # No grid: single invocation; every array is whole-block VMEM-resident
        # (total footprint < 2 MiB, far below any generation's VMEM limit).
        scratch_shapes=[pltpu.VMEM((B * S, HD), jnp.bfloat16)],
        cost_estimate=_cost_estimate(),
    )(x_flat, mask_bias, *kernel_params)
    return out_flat.reshape(B, S, D)


# ---------------- parameter construction (deterministic, synthetic) ----------------
def make_params(key, d=D_MODEL, h=H):
    ks = jax.random.split(key, 16)
    std = 0.02

    def w(k, shape):
        return jax.random.normal(k, shape, jnp.float32) * std

    # "torch layout" stored as (in, out) for y = x @ W + b
    wq = w(ks[0], (d, d * h)); bq = w(ks[1], (d * h,))
    wk = w(ks[2], (d, d * h)); bk = w(ks[3], (d * h,))
    wv = w(ks[4], (d, d * h)); bv = w(ks[5], (d * h,))
    wo = w(ks[6], (d * h, d)); bo = w(ks[7], (d,))
    g1 = jnp.ones((d,), jnp.float32); be1 = jnp.zeros((d,), jnp.float32)
    w1 = w(ks[8], (d, 4 * d)); b1 = w(ks[9], (4 * d,))
    w2 = w(ks[10], (4 * d, d)); b2 = w(ks[11], (d,))
    g2 = jnp.ones((d,), jnp.float32); be2 = jnp.zeros((d,), jnp.float32)
    return (wq, bq, wk, bk, wv, bv, wo, bo, g1, be1, w1, b1, w2, b2, g2, be2)


def to_kernel_layout(p, d=D_MODEL, h=H):
    wq, bq, wk, bk, wv, bv, wo, bo, g1, be1, w1, b1, w2, b2, g2, be2 = p
    scale = 1.0 / math.sqrt(d)

    # torch head split of the (d*h)-wide projection is feature f = d_idx*h + head;
    # repack so head `head` occupies contiguous columns [head*d, (head+1)*d).
    dehead_w = lambda W: W.reshape(d, d, h).transpose(0, 2, 1).reshape(d, h * d)
    dehead_b = lambda b: b.reshape(d, h).transpose(1, 0).reshape(h * d)

    # fold the attention scale into the Q projection (weights + bias)
    wqkv = jnp.concatenate(
        [dehead_w(wq) * scale, dehead_w(wk), dehead_w(wv)], axis=1)    # (d, 3*h*d)
    bqkv = jnp.concatenate(
        [dehead_b(bq) * scale, dehead_b(bk), dehead_b(bv)])[None, :]   # (1, 3*h*d)

    # wo input feature is also f = d_idx*h + head -> reorder rows head-contiguous
    wo_c = wo.reshape(d, h, d).transpose(1, 0, 2).reshape(h * d, d)    # (h*d, d)

    bf16 = lambda a: a.astype(jnp.bfloat16)
    row = lambda v: v[None, :].astype(jnp.float32)
    return (bf16(wqkv), bqkv.astype(jnp.float32),
            bf16(wo_c), row(bo),
            row(g1), row(be1),
            bf16(w1), row(b1), bf16(w2), row(b2),
            row(g2), row(be2))


def make_mask_bias(batch=BATCH, seq=SEQ):
    # Additive bias: 0 within the same batch, NEG_INF across batches (hoisted
    # out of the kernel; a (BS,BS) constant passed as a tiny extra input).
    row_batch = jnp.arange(batch * seq, dtype=jnp.int32) // seq
    return jnp.where(row_batch[:, None] == row_batch[None, :],
                     0.0, NEG_INF).astype(jnp.float32)


# ---------------- pure-JAX reference (mirrors the torch code literally) -------------
def reference_forward(x, p, d=D_MODEL, h=H):
    wq, bq, wk, bk, wv, bv, wo, bo, g1, be1, w1, b1, w2, b2, g2, be2 = p
    B, S, D = x.shape

    def ln(y, g, b):
        m = jnp.mean(y, axis=-1, keepdims=True)
        v = jnp.mean((y - m) ** 2, axis=-1, keepdims=True)
        return (y - m) / jnp.sqrt(v + LN_EPS) * g + b

    q = (x @ wq + bq).reshape(B, S, D, h).transpose(3, 0, 1, 2)   # (h,B,S,D)
    k = (x @ wk + bk).reshape(B, S, D, h).transpose(3, 0, 2, 1)   # (h,B,D,S)
    v = (x @ wv + bv).reshape(B, S, D, h).transpose(3, 0, 1, 2)   # (h,B,S,D)
    s = jnp.einsum('hbqd,hbdk->hbqk', q, k) / math.sqrt(D)
    pattn = jax.nn.softmax(s, axis=-1)
    o = jnp.einsum('hbqk,hbkd->hbqd', pattn, v)
    o = o.transpose(1, 2, 3, 0).reshape(B, S, D * h)
    attended = o @ wo + bo

    y1 = ln(x + attended, g1, be1)
    ff = jnp.maximum(y1 @ w1 + b1, 0.0) @ w2 + b2
    return ln(y1 + ff, g2, be2)


if __name__ == "__main__":
    key = jax.random.PRNGKey(0)
    kx, kp = jax.random.split(key)
    x = jax.random.normal(kx, (BATCH, SEQ, D_MODEL), jnp.float32)

    params_torch_layout = make_params(kp)
    params_kernel = to_kernel_layout(params_torch_layout)
    mask_bias = make_mask_bias()

    out = encoder_forward(x, mask_bias, params_kernel)
    out = jax.block_until_ready(out)

    ref = reference_forward(x, params_torch_layout)
    err = float(jnp.max(jnp.abs(out - ref)))
    assert out.shape == (BATCH, SEQ, D_MODEL)
    # bf16 MXU inputs (weights + activations) set the error floor vs the f32 reference.
    assert err < 1e-2, f"mismatch vs reference: {err}"

    print("KERNEL_OK")
</pallas_src>

<mosaic_0001>
module attributes {stable_mosaic.version = 11 : i64} {
  func.func @encoder_kernel(%arg0: memref<16x128xf32, #tpu.memory_space<vmem>>, %arg1: memref<16x16xf32, #tpu.memory_space<vmem>>, %arg2: memref<128x1536xbf16, #tpu.memory_space<vmem>>, %arg3: memref<1x1536xf32, #tpu.memory_space<vmem>>, %arg4: memref<512x128xbf16, #tpu.memory_space<vmem>>, %arg5: memref<1x128xf32, #tpu.memory_space<vmem>>, %arg6: memref<1x128xf32, #tpu.memory_space<vmem>>, %arg7: memref<1x128xf32, #tpu.memory_space<vmem>>, %arg8: memref<128x512xbf16, #tpu.memory_space<vmem>>, %arg9: memref<1x512xf32, #tpu.memory_space<vmem>>, %arg10: memref<512x128xbf16, #tpu.memory_space<vmem>>, %arg11: memref<1x128xf32, #tpu.memory_space<vmem>>, %arg12: memref<1x128xf32, #tpu.memory_space<vmem>>, %arg13: memref<1x128xf32, #tpu.memory_space<vmem>>, %arg14: memref<16x128xf32, #tpu.memory_space<vmem>>, %arg15: memref<16x512xbf16, #tpu.memory_space<vmem>>) attributes {dimension_semantics = [], scalar_prefetch = 0 : i64, scratch_operands = 1 : i64, tpu.core_type = #tpu.core_type<tc>} {
    %c0 = arith.constant 0 : index
    %c0_0 = arith.constant 0 : index
    %0 = vector.load %arg0[%c0, %c0_0] : memref<16x128xf32, #tpu.memory_space<vmem>>, vector<16x128xf32>
    %c0_1 = arith.constant 0 : index
    %c0_2 = arith.constant 0 : index
    %1 = vector.load %arg1[%c0_1, %c0_2] : memref<16x16xf32, #tpu.memory_space<vmem>>, vector<16x16xf32>
    %2 = arith.truncf %0 : vector<16x128xf32> to vector<16x128xbf16>
    %c0_3 = arith.constant 0 : index
    %c0_4 = arith.constant 0 : index
    %3 = vector.load %arg2[%c0_3, %c0_4] : memref<128x1536xbf16, #tpu.memory_space<vmem>>, vector<128x1536xbf16>
    %cst = arith.constant dense<0.000000e+00> : vector<16x1536xf32>
    %4 = tpu.matmul %2, %3, %cst {dimension_numbers = #tpu.dot_dimension_numbers<[1], [0], [0], [1], [0, 0, 1, 1], [], []>} : vector<16x128xbf16>, vector<128x1536xbf16>, vector<16x1536xf32> -> vector<16x1536xf32>
    %c0_5 = arith.constant 0 : index
    %c0_6 = arith.constant 0 : index
    %5 = vector.load %arg3[%c0_5, %c0_6] : memref<1x1536xf32, #tpu.memory_space<vmem>>, vector<1x1536xf32>
    %6 = vector.broadcast %5 : vector<1x1536xf32> to vector<16x1536xf32>
    %7 = arith.addf %4, %6 : vector<16x1536xf32>
    %8 = arith.truncf %7 : vector<16x1536xf32> to vector<16x1536xbf16>
    %9 = vector.extract_strided_slice %8 {offsets = [0, 0], sizes = [16, 128], strides = [1, 1]} : vector<16x1536xbf16> to vector<16x128xbf16>
    %10 = vector.extract_strided_slice %8 {offsets = [0, 512], sizes = [16, 128], strides = [1, 1]} : vector<16x1536xbf16> to vector<16x128xbf16>
    %11 = vector.extract_strided_slice %8 {offsets = [0, 1024], sizes = [16, 128], strides = [1, 1]} : vector<16x1536xbf16> to vector<16x128xbf16>
    %cst_7 = arith.constant dense<0.000000e+00> : vector<16x16xf32>
    %12 = tpu.matmul %9, %10, %cst_7 {dimension_numbers = #tpu.dot_dimension_numbers<[1], [1], [0], [0], [0, 0, 1, 0], [], []>} : vector<16x128xbf16>, vector<16x128xbf16>, vector<16x16xf32> -> vector<16x16xf32>
    %13 = arith.addf %12, %1 : vector<16x16xf32>
    %cst_8 = arith.constant dense<0xFF800000> : vector<16xf32>
    %14 = vector.multi_reduction <maximumf>, %13, %cst_8 [1] : vector<16x16xf32> to vector<16xf32>
    %15 = vector.shape_cast %14 : vector<16xf32> to vector<16x1xf32>
    %16 = vector.broadcast %15 : vector<16x1xf32> to vector<16x16xf32>
    %17 = arith.subf %13, %16 : vector<16x16xf32>
    %18 = math.exp %17 : vector<16x16xf32>
    %cst_9 = arith.constant dense<0.000000e+00> : vector<16xf32>
    %19 = vector.multi_reduction <add>, %18, %cst_9 [1] : vector<16x16xf32> to vector<16xf32>
    %20 = vector.shape_cast %19 : vector<16xf32> to vector<16x1xf32>
    %21 = tpu.reciprocal %20 {approx = true} : vector<16x1xf32> -> vector<16x1xf32>
    %22 = vector.broadcast %21 : vector<16x1xf32> to vector<16x16xf32>
    %23 = arith.mulf %18, %22 : vector<16x16xf32>
    %24 = arith.truncf %23 : vector<16x16xf32> to vector<16x16xbf16>
    %cst_10 = arith.constant dense<0.000000e+00> : vector<16x128xf32>
    %25 = tpu.matmul %24, %11, %cst_10 {dimension_numbers = #tpu.dot_dimension_numbers<[1], [0], [0], [1], [0, 0, 1, 1], [], []>} : vector<16x16xbf16>, vector<16x128xbf16>, vector<16x128xf32> -> vector<16x128xf32>
    %26 = arith.truncf %25 : vector<16x128xf32> to vector<16x128xbf16>
    %c0_11 = arith.constant 0 : index
    %c0_12 = arith.constant 0 : index
    %27 = vector.load %arg15[%c0_11, %c0_12] : memref<16x512xbf16, #tpu.memory_space<vmem>>, vector<16x128xbf16>
    tpu.vector_store %arg15[%c0_11, %c0_12], %26 {strides = array<i32>} : memref<16x512xbf16, #tpu.memory_space<vmem>>, vector<16x128xbf16>,
    %28 = vector.extract_strided_slice %8 {offsets = [0, 128], sizes = [16, 128], strides = [1, 1]} : vector<16x1536xbf16> to vector<16x128xbf16>
    %29 = vector.extract_strided_slice %8 {offsets = [0, 640], sizes = [16, 128], strides = [1, 1]} : vector<16x1536xbf16> to vector<16x128xbf16>
    %30 = vector.extract_strided_slice %8 {offsets = [0, 1152], sizes = [16, 128], strides = [1, 1]} : vector<16x1536xbf16> to vector<16x128xbf16>
    %cst_13 = arith.constant dense<0.000000e+00> : vector<16x16xf32>
    %31 = tpu.matmul %28, %29, %cst_13 {dimension_numbers = #tpu.dot_dimension_numbers<[1], [1], [0], [0], [0, 0, 1, 0], [], []>} : vector<16x128xbf16>, vector<16x128xbf16>, vector<16x16xf32> -> vector<16x16xf32>
    %32 = arith.addf %31, %1 : vector<16x16xf32>
    %cst_14 = arith.constant dense<0xFF800000> : vector<16xf32>
    %33 = vector.multi_reduction <maximumf>, %32, %cst_14 [1] : vector<16x16xf32> to vector<16xf32>
    %34 = vector.shape_cast %33 : vector<16xf32> to vector<16x1xf32>
    %35 = vector.broadcast %34 : vector<16x1xf32> to vector<16x16xf32>
    %36 = arith.subf %32, %35 : vector<16x16xf32>
    %37 = math.exp %36 : vector<16x16xf32>
    %cst_15 = arith.constant dense<0.000000e+00> : vector<16xf32>
    %38 = vector.multi_reduction <add>, %37, %cst_15 [1] : vector<16x16xf32> to vector<16xf32>
    %39 = vector.shape_cast %38 : vector<16xf32> to vector<16x1xf32>
    %40 = tpu.reciprocal %39 {approx = true} : vector<16x1xf32> -> vector<16x1xf32>
    %41 = vector.broadcast %40 : vector<16x1xf32> to vector<16x16xf32>
    %42 = arith.mulf %37, %41 : vector<16x16xf32>
    %43 = arith.truncf %42 : vector<16x16xf32> to vector<16x16xbf16>
    %cst_16 = arith.constant dense<0.000000e+00> : vector<16x128xf32>
    %44 = tpu.matmul %43, %30, %cst_16 {dimension_numbers = #tpu.dot_dimension_numbers<[1], [0], [0], [1], [0, 0, 1, 1], [], []>} : vector<16x16xbf16>, vector<16x128xbf16>, vector<16x128xf32> -> vector<16x128xf32>
    %45 = arith.truncf %44 : vector<16x128xf32> to vector<16x128xbf16>
    %c0_17 = arith.constant 0 : index
    %c128 = arith.constant 128 : index
    %46 = vector.load %arg15[%c0_17, %c128] : memref<16x512xbf16, #tpu.memory_space<vmem>>, vector<16x128xbf16>
    tpu.vector_store %arg15[%c0_17, %c128], %45 {strides = array<i32>} : memref<16x512xbf16, #tpu.memory_space<vmem>>, vector<16x128xbf16>,
    %47 = vector.extract_strided_slice %8 {offsets = [0, 256], sizes = [16, 128], strides = [1, 1]} : vector<16x1536xbf16> to vector<16x128xbf16>
    %48 = vector.extract_strided_slice %8 {offsets = [0, 768], sizes = [16, 128], strides = [1, 1]} : vector<16x1536xbf16> to vector<16x128xbf16>
    %49 = vector.extract_strided_slice %8 {offsets = [0, 1280], sizes = [16, 128], strides = [1, 1]} : vector<16x1536xbf16> to vector<16x128xbf16>
    %cst_18 = arith.constant dense<0.000000e+00> : vector<16x16xf32>
    %50 = tpu.matmul %47, %48, %cst_18 {dimension_numbers = #tpu.dot_dimension_numbers<[1], [1], [0], [0], [0, 0, 1, 0], [], []>} : vector<16x128xbf16>, vector<16x128xbf16>, vector<16x16xf32> -> vector<16x16xf32>
    %51 = arith.addf %50, %1 : vector<16x16xf32>
    %cst_19 = arith.constant dense<0xFF800000> : vector<16xf32>
    %52 = vector.multi_reduction <maximumf>, %51, %cst_19 [1] : vector<16x16xf32> to vector<16xf32>
    %53 = vector.shape_cast %52 : vector<16xf32> to vector<16x1xf32>
    %54 = vector.broadcast %53 : vector<16x1xf32> to vector<16x16xf32>
    %55 = arith.subf %51, %54 : vector<16x16xf32>
    %56 = math.exp %55 : vector<16x16xf32>
    %cst_20 = arith.constant dense<0.000000e+00> : vector<16xf32>
    %57 = vector.multi_reduction <add>, %56, %cst_20 [1] : vector<16x16xf32> to vector<16xf32>
    %58 = vector.shape_cast %57 : vector<16xf32> to vector<16x1xf32>
    %59 = tpu.reciprocal %58 {approx = true} : vector<16x1xf32> -> vector<16x1xf32>
    %60 = vector.broadcast %59 : vector<16x1xf32> to vector<16x16xf32>
    %61 = arith.mulf %56, %60 : vector<16x16xf32>
    %62 = arith.truncf %61 : vector<16x16xf32> to vector<16x16xbf16>
    %cst_21 = arith.constant dense<0.000000e+00> : vector<16x128xf32>
    %63 = tpu.matmul %62, %49, %cst_21 {dimension_numbers = #tpu.dot_dimension_numbers<[1], [0], [0], [1], [0, 0, 1, 1], [], []>} : vector<16x16xbf16>, vector<16x128xbf16>, vector<16x128xf32> -> vector<16x128xf32>
    %64 = arith.truncf %63 : vector<16x128xf32> to vector<16x128xbf16>
    %c0_22 = arith.constant 0 : index
    %c256 = arith.constant 256 : index
    %65 = vector.load %arg15[%c0_22, %c256] : memref<16x512xbf16, #tpu.memory_space<vmem>>, vector<16x128xbf16>
    tpu.vector_store %arg15[%c0_22, %c256], %64 {strides = array<i32>} : memref<16x512xbf16, #tpu.memory_space<vmem>>, vector<16x128xbf16>,
    %66 = vector.extract_strided_slice %8 {offsets = [0, 384], sizes = [16, 128], strides = [1, 1]} : vector<16x1536xbf16> to vector<16x128xbf16>
    %67 = vector.extract_strided_slice %8 {offsets = [0, 896], sizes = [16, 128], strides = [1, 1]} : vector<16x1536xbf16> to vector<16x128xbf16>
    %68 = vector.extract_strided_slice %8 {offsets = [0, 1408], sizes = [16, 128], strides = [1, 1]} : vector<16x1536xbf16> to vector<16x128xbf16>
    %cst_23 = arith.constant dense<0.000000e+00> : vector<16x16xf32>
    %69 = tpu.matmul %66, %67, %cst_23 {dimension_numbers = #tpu.dot_dimension_numbers<[1], [1], [0], [0], [0, 0, 1, 0], [], []>} : vector<16x128xbf16>, vector<16x128xbf16>, vector<16x16xf32> -> vector<16x16xf32>
    %70 = arith.addf %69, %1 : vector<16x16xf32>
    %cst_24 = arith.constant dense<0xFF800000> : vector<16xf32>
    %71 = vector.multi_reduction <maximumf>, %70, %cst_24 [1] : vector<16x16xf32> to vector<16xf32>
    %72 = vector.shape_cast %71 : vector<16xf32> to vector<16x1xf32>
    %73 = vector.broadcast %72 : vector<16x1xf32> to vector<16x16xf32>
    %74 = arith.subf %70, %73 : vector<16x16xf32>
    %75 = math.exp %74 : vector<16x16xf32>
    %cst_25 = arith.constant dense<0.000000e+00> : vector<16xf32>
    %76 = vector.multi_reduction <add>, %75, %cst_25 [1] : vector<16x16xf32> to vector<16xf32>
    %77 = vector.shape_cast %76 : vector<16xf32> to vector<16x1xf32>
    %78 = tpu.reciprocal %77 {approx = true} : vector<16x1xf32> -> vector<16x1xf32>
    %79 = vector.broadcast %78 : vector<16x1xf32> to vector<16x16xf32>
    %80 = arith.mulf %75, %79 : vector<16x16xf32>
    %81 = arith.truncf %80 : vector<16x16xf32> to vector<16x16xbf16>
    %cst_26 = arith.constant dense<0.000000e+00> : vector<16x128xf32>
    %82 = tpu.matmul %81, %68, %cst_26 {dimension_numbers = #tpu.dot_dimension_numbers<[1], [0], [0], [1], [0, 0, 1, 1], [], []>} : vector<16x16xbf16>, vector<16x128xbf16>, vector<16x128xf32> -> vector<16x128xf32>
    %83 = arith.truncf %82 : vector<16x128xf32> to vector<16x128xbf16>
    %c0_27 = arith.constant 0 : index
    %c384 = arith.constant 384 : index
    %84 = vector.load %arg15[%c0_27, %c384] : memref<16x512xbf16, #tpu.memory_space<vmem>>, vector<16x128xbf16>
    tpu.vector_store %arg15[%c0_27, %c384], %83 {strides = array<i32>} : memref<16x512xbf16, #tpu.memory_space<vmem>>, vector<16x128xbf16>,
    %c0_28 = arith.constant 0 : index
    %c0_29 = arith.constant 0 : index
    %85 = vector.load %arg15[%c0_28, %c0_29] : memref<16x512xbf16, #tpu.memory_space<vmem>>, vector<16x512xbf16>
    %c0_30 = arith.constant 0 : index
    %c0_31 = arith.constant 0 : index
    %86 = vector.load %arg4[%c0_30, %c0_31] : memref<512x128xbf16, #tpu.memory_space<vmem>>, vector<512x128xbf16>
    %cst_32 = arith.constant dense<0.000000e+00> : vector<16x128xf32>
    %87 = tpu.matmul %85, %86, %cst_32 {dimension_numbers = #tpu.dot_dimension_numbers<[1], [0], [0], [1], [0, 0, 1, 1], [], []>} : vector<16x512xbf16>, vector<512x128xbf16>, vector<16x128xf32> -> vector<16x128xf32>
    %c0_33 = arith.constant 0 : index
    %c0_34 = arith.constant 0 : index
    %88 = vector.load %arg5[%c0_33, %c0_34] : memref<1x128xf32, #tpu.memory_space<vmem>>, vector<1x128xf32>
    %89 = vector.broadcast %88 : vector<1x128xf32> to vector<16x128xf32>
    %90 = arith.addf %87, %89 : vector<16x128xf32>
    %91 = arith.addf %0, %90 : vector<16x128xf32>
    %c0_35 = arith.constant 0 : index
    %c0_36 = arith.constant 0 : index
    %92 = vector.load %arg6[%c0_35, %c0_36] : memref<1x128xf32, #tpu.memory_space<vmem>>, vector<1x128xf32>
    %c0_37 = arith.constant 0 : index
    %c0_38 = arith.constant 0 : index
    %93 = vector.load %arg7[%c0_37, %c0_38] : memref<1x128xf32, #tpu.memory_space<vmem>>, vector<1x128xf32>
    %cst_39 = arith.constant dense<0.000000e+00> : vector<16xf32>
    %94 = vector.multi_reduction <add>, %91, %cst_39 [1] : vector<16x128xf32> to vector<16xf32>
    %95 = vector.shape_cast %94 : vector<16xf32> to vector<16x1xf32>
    %96 = arith.mulf %91, %91 : vector<16x128xf32>
    %cst_40 = arith.constant dense<0.000000e+00> : vector<16xf32>
    %97 = vector.multi_reduction <add>, %96, %cst_40 [1] : vector<16x128xf32> to vector<16xf32>
    %98 = vector.shape_cast %97 : vector<16xf32> to vector<16x1xf32>
    %cst_41 = arith.constant 7.812500e-03 : f32
    %99 = vector.broadcast %cst_41 : f32 to vector<16x1xf32>
    %100 = arith.mulf %95, %99 : vector<16x1xf32>
    %cst_42 = arith.constant 7.812500e-03 : f32
    %101 = vector.broadcast %cst_42 : f32 to vector<16x1xf32>
    %102 = arith.mulf %98, %101 : vector<16x1xf32>
    %103 = arith.mulf %100, %100 : vector<16x1xf32>
    %104 = arith.subf %102, %103 : vector<16x1xf32>
    %105 = vector.broadcast %100 : vector<16x1xf32> to vector<16x128xf32>
    %106 = arith.subf %91, %105 : vector<16x128xf32>
    %cst_43 = arith.constant 9.99999974E-6 : f32
    %107 = vector.broadcast %cst_43 : f32 to vector<16x1xf32>
    %108 = arith.addf %104, %107 : vector<16x1xf32>
    %109 = math.rsqrt %108 : vector<16x1xf32>
    %110 = vector.broadcast %109 : vector<16x1xf32> to vector<16x128xf32>
    %111 = arith.mulf %106, %110 : vector<16x128xf32>
    %112 = vector.broadcast %92 : vector<1x128xf32> to vector<16x128xf32>
    %113 = arith.mulf %111, %112 : vector<16x128xf32>
    %114 = vector.broadcast %93 : vector<1x128xf32> to vector<16x128xf32>
    %115 = arith.addf %113, %114 : vector<16x128xf32>
    %116 = arith.truncf %115 : vector<16x128xf32> to vector<16x128xbf16>
    %c0_44 = arith.constant 0 : index
    %c0_45 = arith.constant 0 : index
    %117 = vector.load %arg8[%c0_44, %c0_45] : memref<128x512xbf16, #tpu.memory_space<vmem>>, vector<128x512xbf16>
    %cst_46 = arith.constant dense<0.000000e+00> : vector<16x512xf32>
    %118 = tpu.matmul %116, %117, %cst_46 {dimension_numbers = #tpu.dot_dimension_numbers<[1], [0], [0], [1], [0, 0, 1, 1], [], []>} : vector<16x128xbf16>, vector<128x512xbf16>, vector<16x512xf32> -> vector<16x512xf32>
    %c0_47 = arith.constant 0 : index
    %c0_48 = arith.constant 0 : index
    %119 = vector.load %arg9[%c0_47, %c0_48] : memref<1x512xf32, #tpu.memory_space<vmem>>, vector<1x512xf32>
    %120 = vector.broadcast %119 : vector<1x512xf32> to vector<16x512xf32>
    %121 = arith.addf %118, %120 : vector<16x512xf32>
    %cst_49 = arith.constant 0.000000e+00 : f32
    %122 = vector.broadcast %cst_49 : f32 to vector<16x512xf32>
    %123 = arith.maximumf %121, %122 : vector<16x512xf32>
    %124 = arith.truncf %123 : vector<16x512xf32> to vector<16x512xbf16>
    %c0_50 = arith.constant 0 : index
    %c0_51 = arith.constant 0 : index
    %125 = vector.load %arg10[%c0_50, %c0_51] : memref<512x128xbf16, #tpu.memory_space<vmem>>, vector<512x128xbf16>
    %cst_52 = arith.constant dense<0.000000e+00> : vector<16x128xf32>
    %126 = tpu.matmul %124, %125, %cst_52 {dimension_numbers = #tpu.dot_dimension_numbers<[1], [0], [0], [1], [0, 0, 1, 1], [], []>} : vector<16x512xbf16>, vector<512x128xbf16>, vector<16x128xf32> -> vector<16x128xf32>
    %c0_53 = arith.constant 0 : index
    %c0_54 = arith.constant 0 : index
    %127 = vector.load %arg11[%c0_53, %c0_54] : memref<1x128xf32, #tpu.memory_space<vmem>>, vector<1x128xf32>
    %128 = vector.broadcast %127 : vector<1x128xf32> to vector<16x128xf32>
    %129 = arith.addf %126, %128 : vector<16x128xf32>
    %130 = arith.addf %115, %129 : vector<16x128xf32>
    %c0_55 = arith.constant 0 : index
    %c0_56 = arith.constant 0 : index
    %131 = vector.load %arg12[%c0_55, %c0_56] : memref<1x128xf32, #tpu.memory_space<vmem>>, vector<1x128xf32>
    %c0_57 = arith.constant 0 : index
    %c0_58 = arith.constant 0 : index
    %132 = vector.load %arg13[%c0_57, %c0_58] : memref<1x128xf32, #tpu.memory_space<vmem>>, vector<1x128xf32>
    %cst_59 = arith.constant dense<0.000000e+00> : vector<16xf32>
    %133 = vector.multi_reduction <add>, %130, %cst_59 [1] : vector<16x128xf32> to vector<16xf32>
    %134 = vector.shape_cast %133 : vector<16xf32> to vector<16x1xf32>
    %135 = arith.mulf %130, %130 : vector<16x128xf32>
    %cst_60 = arith.constant dense<0.000000e+00> : vector<16xf32>
    %136 = vector.multi_reduction <add>, %135, %cst_60 [1] : vector<16x128xf32> to vector<16xf32>
    %137 = vector.shape_cast %136 : vector<16xf32> to vector<16x1xf32>
    %cst_61 = arith.constant 7.812500e-03 : f32
    %138 = vector.broadcast %cst_61 : f32 to vector<16x1xf32>
    %139 = arith.mulf %134, %138 : vector<16x1xf32>
    %cst_62 = arith.constant 7.812500e-03 : f32
    %140 = vector.broadcast %cst_62 : f32 to vector<16x1xf32>
    %141 = arith.mulf %137, %140 : vector<16x1xf32>
    %142 = arith.mulf %139, %139 : vector<16x1xf32>
    %143 = arith.subf %141, %142 : vector<16x1xf32>
    %144 = vector.broadcast %139 : vector<16x1xf32> to vector<16x128xf32>
    %145 = arith.subf %130, %144 : vector<16x128xf32>
    %cst_63 = arith.constant 9.99999974E-6 : f32
    %146 = vector.broadcast %cst_63 : f32 to vector<16x1xf32>
    %147 = arith.addf %143, %146 : vector<16x1xf32>
    %148 = math.rsqrt %147 : vector<16x1xf32>
    %149 = vector.broadcast %148 : vector<16x1xf32> to vector<16x128xf32>
    %150 = arith.mulf %145, %149 : vector<16x128xf32>
    %151 = vector.broadcast %131 : vector<1x128xf32> to vector<16x128xf32>
    %152 = arith.mulf %150, %151 : vector<16x128xf32>
    %153 = vector.broadcast %132 : vector<1x128xf32> to vector<16x128xf32>
    %154 = arith.addf %152, %153 : vector<16x128xf32>
    %c0_64 = arith.constant 0 : index
    %c0_65 = arith.constant 0 : index
    %155 = vector.load %arg14[%c0_64, %c0_65] : memref<16x128xf32, #tpu.memory_space<vmem>>, vector<16x128xf32>
    tpu.vector_store %arg14[%c0_64, %c0_65], %154 {strides = array<i32>} : memref<16x128xf32, #tpu.memory_space<vmem>>, vector<16x128xf32>,
    return
  }
}

</mosaic_0001>

<bundles_post_ra>
// kernel: tpu_custom_call.1
= control target key start
LH: loop header
LB: loop body
LE: loop exit
PB: predicated region body
PF: predicated region fallthrough
CT: control target
= control target key end

     0   :  { %19 = vsyncpa [#allocation4], 0  ;;  %s3852_s0 = inlined_call_operand.hbm [shape: f32[16,128], index: 0, kind: input, shape index: {}]   ;;  %s3853_s1 = inlined_call_operand.hbm [shape: f32[16,16], index: 1, kind: input, shape index: {}]   ;;  %s3854_s2 = inlined_call_operand.hbm [shape: bf16[128,1536], index: 2, kind: input, shape index: {}]   ;;  %s3855_s3 = inlined_call_operand.hbm [shape: f32[1,1536], index: 3, kind: input, shape index: {}]   ;;  %s3856_s4 = inlined_call_operand.hbm [shape: bf16[512,128], index: 4, kind: input, shape index: {}]   ;;  %s3857_s5 = inlined_call_operand.vmem [shape: f32[1,128], index: 5, kind: input, shape index: {}]   ;;  %s3858_s6 = inlined_call_operand.vmem [shape: f32[1,128], index: 6, kind: input, shape index: {}]   ;;  %s3859_s7 = inlined_call_operand.vmem [shape: f32[1,128], index: 7, kind: input, shape index: {}]   ;;  %s3860_s8 = inlined_call_operand.hbm [shape: bf16[128,512], index: 8, kind: input, shape index: {}]   ;;  %s3861_s9 = inlined_call_operand.vmem [shape: f32[1,512], index: 9, kind: input, shape index: {}]   ;;  %s3862_s10 = inlined_call_operand.hbm [shape: bf16[512,128], index: 10, kind: input, shape index: {}]   ;;  %s3863_s11 = inlined_call_operand.vmem [shape: f32[1,128], index: 11, kind: input, shape index: {}]   ;;  %s3864_s12 = inlined_call_operand.vmem [shape: f32[1,128], index: 12, kind: input, shape index: {}]   ;;  %s3865_s13 = inlined_call_operand.vmem [shape: f32[1,128], index: 13, kind: input, shape index: {}]   ;;  %s3866_s14 = inlined_call_operand.hbm [shape: f32[16,128], index: 14, kind: output, shape index: {}]  }
   0x1   :  { %20 = vsyncpa [#allocation7], 0 }
   0x2   :  { %21 = vsyncpa [#allocation10], 0 }
   0x3   :  { %22 = vsyncpa [#allocation13], 0 }
   0x4   :  { %23 = vsyncpa [#allocation5], 0  ;;  %s3476_s29 = smov [#allocation6]   ;;  %s3477_s15 = smov [#allocation9]  }
   0x5   :  { %s41_s30 = sshll.u32 %s3476_s29, 4  ;;  %s66_s16 = sshll.u32 %s3477_s15, 4  ;;  %s42_s30 = int_to_ptr.vmem [resolvable:$true] %s41_s30  ;;  %s67_s16 = int_to_ptr.vmem [resolvable:$true] %s66_s16 }
   0x6   :  { %s3290_s19 = scalar_lea.hbm %s3853_s1, 256 }
   0x7   :  { %p3291_p0 = scmp.ne.s32.totalorder %s3853_s1, %s3290_s19  ;;  %p3294_p1 = scmp.lt.u32.totalorder %s3290_s19, %s3853_s1 }
   0x9   :  { %p3296_p2 = pnand %p3294_p1, %p3291_p0 }
   0xb   :  { %3299 = shalt.err (!%p3296_p2)
}
   0xc   :  { %s3300_s24 = scalar_lea.vmem %s42_s30, 256  ;;  %p3305_p4 = scmp.lt.s32.totalorder %s42_s30, %s42_s30 }
   0xd   :  { %p3301_p3 = scmp.ne.s32.totalorder %s42_s30, %s3300_s24  ;;  %p3306_p5 = scmp.lt.s32.totalorder %s3300_s24, %s3300_s24 }
   0xf   :  { %p3307_p6 = por %p3306_p5, %p3305_p4 }
  0x11   :  { %p3308_p7 = pnand %p3307_p6, %p3301_p3 }
  0x13   :  { %3311 = shalt.err (!%p3308_p7)
}
  0x14   :  { %s3478_s25 = smov 128   ;;  %s3479_s26 = smov 8  }
  0x15   :  { %47 = dma.hbm_to_vmem [thread:$0]  %s3853_s1, 256, %s42_s30, [#allocation7], %s3478_s25, %s3478_s25, %s3479_s26  }
  0x16   :  { %s3312_s17 = scalar_lea.hbm %s3855_s3, 192 }
  0x17   :  { %p3313_p8 = scmp.ne.s32.totalorder %s3855_s3, %s3312_s17  ;;  %p3316_p9 = scmp.lt.u32.totalorder %s3312_s17, %s3855_s3 }
  0x19   :  { %p3318_p10 = pnand %p3316_p9, %p3313_p8 }
  0x1b   :  { %3321 = shalt.err (!%p3318_p10)
}
  0x1c   :  { %s3322_s22 = scalar_lea.vmem %s67_s16, 192  ;;  %p3327_p12 = scmp.lt.s32.totalorder %s67_s16, %s67_s16 }
  0x1d   :  { %p3323_p11 = scmp.ne.s32.totalorder %s67_s16, %s3322_s22  ;;  %p3328_p13 = scmp.lt.s32.totalorder %s3322_s22, %s3322_s22 }
  0x1f   :  { %p3329_p0 = por %p3328_p13, %p3327_p12 }
  0x21   :  { %p3330_p1 = pnand %p3329_p0, %p3323_p11 }
  0x23   :  { %3333 = shalt.err (!%p3330_p1)
}
  0x24   :  { %69 = dma.hbm_to_vmem [thread:$0]  %s3855_s3, 192, %s67_s16, [#allocation10]  }
  0x25   :  { %s3480_s23 = smov [#allocation12]   ;;  %s3334_s29 = scalar_lea.hbm %s3860_s8, 4096 }
  0x26   :  { %s93_s24 = sshll.u32 %s3480_s23, 4  ;;  %p3335_p2 = scmp.ne.s32.totalorder %s3860_s8, %s3334_s29  ;;  %s94_s24 = int_to_ptr.vmem [resolvable:$true] %s93_s24 }
  0x27   :  { %p3338_p3 = scmp.lt.u32.totalorder %s3334_s29, %s3860_s8 }
  0x29   :  { %p3340_p4 = pnand %p3338_p3, %p3335_p2 }
  0x2b   :  { %3343 = shalt.err (!%p3340_p4)
}
  0x2c   :  { %s3344_s20 = scalar_lea.vmem %s94_s24, 4096  ;;  %p3349_p6 = scmp.lt.s32.totalorder %s94_s24, %s94_s24 }
  0x2d   :  { %p3345_p5 = scmp.ne.s32.totalorder %s94_s24, %s3344_s20  ;;  %p3350_p7 = scmp.lt.s32.totalorder %s3344_s20, %s3344_s20 }
  0x2f   :  { %p3351_p8 = por %p3350_p7, %p3349_p6 }
  0x31   :  { %p3352_p9 = pnand %p3351_p8, %p3345_p5 }
  0x33   :  { %3355 = shalt.err (!%p3352_p9)
}
  0x34   :  { %s3481_s3 = smov 256   ;;  %s3482_s16 = smov 16  }
  0x35   :  { %99 = dma.hbm_to_vmem [thread:$0]  %s3860_s8, 4096, %s94_s24, [#allocation13], %s3481_s3, %s3481_s3, %s3482_s16  }
  0x36   :  { %s3483_s1 = smov [#allocation3]   ;;  %s3484_s23 = smov [#allocation8]  }
  0x37   :  { %s29_s30 = sshll.u32 %s3483_s1, 4  ;;  %s53_s27 = sshll.u32 %s3484_s23, 4  ;;  %s30_s30 = int_to_ptr.vmem [resolvable:$true] %s29_s30  ;;  %s54_s27 = int_to_ptr.vmem [resolvable:$true] %s53_s27 }
  0x38   :  { %s3356_s15 = scalar_lea.hbm %s3852_s0, 256 }
  0x39   :  { %p3357_p10 = scmp.ne.s32.totalorder %s3852_s0, %s3356_s15  ;;  %p3360_p11 = scmp.lt.u32.totalorder %s3356_s15, %s3852_s0 }
  0x3b   :  { %p3362_p12 = pnand %p3360_p11, %p3357_p10 }
  0x3d   :  { %3365 = shalt.err (!%p3362_p12)
}
  0x3e   :  { %s3366_s8 = scalar_lea.vmem %s30_s30, 256  ;;  %p3371_p0 = scmp.lt.s32.totalorder %s30_s30, %s30_s30 }
  0x3f   :  { %p3367_p13 = scmp.ne.s32.totalorder %s30_s30, %s3366_s8  ;;  %p3372_p1 = scmp.lt.s32.totalorder %s3366_s8, %s3366_s8 }
  0x41   :  { %p3373_p2 = por %p3372_p1, %p3371_p0 }
  0x43   :  { %p3374_p3 = pnand %p3373_p2, %p3367_p13 }
  0x45   :  { %3377 = shalt.err (!%p3374_p3)
}
  0x46   :  { %35 = dma.hbm_to_vmem [thread:$0]  %s3852_s0, 256, %s30_s30, [#allocation4], %s3478_s25, %s3478_s25, %s3479_s26  }
  0x47   :  { %s3378_s22 = scalar_lea.hbm %s3854_s2, 12288 }
  0x48   :  { %p3379_p4 = scmp.ne.s32.totalorder %s3854_s2, %s3378_s22  ;;  %p3382_p5 = scmp.lt.u32.totalorder %s3378_s22, %s3854_s2 }
  0x4a   :  { %p3384_p6 = pnand %p3382_p5, %p3379_p4 }
  0x4c   :  { %3387 = shalt.err (!%p3384_p6)
}
  0x4d   :  { %s3388_s15 = scalar_lea.vmem %s54_s27, 12288  ;;  %p3393_p8 = scmp.lt.s32.totalorder %s54_s27, %s54_s27 }
  0x4e   :  { %p3389_p7 = scmp.ne.s32.totalorder %s54_s27, %s3388_s15  ;;  %p3394_p9 = scmp.lt.s32.totalorder %s3388_s15, %s3388_s15 }
  0x50   :  { %p3395_p10 = por %p3394_p9, %p3393_p8 }
  0x52   :  { %p3396_p11 = pnand %p3395_p10, %p3389_p7 }
  0x54   :  { %3399 = shalt.err (!%p3396_p11)
}
  0x55   :  { %s3485_s0 = smov 768   ;;  %s3486_s30 = smov 48  }
  0x56   :  { %59 = dma.hbm_to_vmem [thread:$0]  %s3854_s2, 12288, %s54_s27, [#allocation7], %s3485_s0, %s3485_s0, %s3486_s30  }
  0x57   :  { %s3487_s19 = smov [#allocation11]   ;;  %s3400_s3 = scalar_lea.hbm %s3856_s4, 4096 }
  0x58   :  { %s75_s20 = sshll.u32 %s3487_s19, 4  ;;  %p3401_p12 = scmp.ne.s32.totalorder %s3856_s4, %s3400_s3  ;;  %s76_s20 = int_to_ptr.vmem [resolvable:$true] %s75_s20 }
  0x59   :  { %p3404_p13 = scmp.lt.u32.totalorder %s3400_s3, %s3856_s4 }
  0x5b   :  { %p3406_p0 = pnand %p3404_p13, %p3401_p12 }
  0x5d   :  { %3409 = shalt.err (!%p3406_p0)
}
  0x5e   :  { %s3410_s23 = scalar_lea.vmem %s76_s20, 4096  ;;  %p3415_p2 = scmp.lt.s32.totalorder %s76_s20, %s76_s20 }
  0x5f   :  { %p3411_p1 = scmp.ne.s32.totalorder %s76_s20, %s3410_s23  ;;  %p3416_p3 = scmp.lt.s32.totalorder %s3410_s23, %s3410_s23 }
  0x61   :  { %p3417_p4 = por %p3416_p3, %p3415_p2 }
  0x63   :  { %p3418_p5 = pnand %p3417_p4, %p3411_p1 }
  0x65   :  { %3421 = shalt.err (!%p3418_p5)
}
  0x66   :  { %s3488_s2 = smov 64   ;;  %s3489_s27 = smov 4  }
  0x67   :  { %81 = dma.hbm_to_vmem [thread:$0]  %s3856_s4, 4096, %s76_s20, [#allocation10], %s3488_s2, %s3488_s2, %s3489_s27  }
  0x68   :  { %s3490_s15 = smov [#allocation14]   ;;  %s3422_s18 = scalar_lea.hbm %s3862_s10, 4096 }
  0x69   :  { %s107_s0 = sshll.u32 %s3490_s15, 4  ;;  %p3423_p6 = scmp.ne.s32.totalorder %s3862_s10, %s3422_s18  ;;  %s108_s0 = int_to_ptr.vmem [resolvable:$true] %s107_s0 }
  0x6a   :  { %p3426_p7 = scmp.lt.u32.totalorder %s3422_s18, %s3862_s10 }
  0x6c   :  { %p3428_p8 = pnand %p3426_p7, %p3423_p6 }
  0x6e   :  { %3431 = shalt.err (!%p3428_p8)
}
  0x6f   :  { %s3432_s16 = scalar_lea.vmem %s108_s0, 4096  ;;  %p3437_p10 = scmp.lt.s32.totalorder %s108_s0, %s108_s0 }
  0x70   :  { %p3433_p9 = scmp.ne.s32.totalorder %s108_s0, %s3432_s16  ;;  %p3438_p11 = scmp.lt.s32.totalorder %s3432_s16, %s3432_s16 }
  0x72   :  { %p3439_p12 = por %p3438_p11, %p3437_p10 }
  0x74   :  { %p3440_p13 = pnand %p3439_p12, %p3433_p9 }
  0x76   :  { %3443 = shalt.err (!%p3440_p13)
}
  0x77   :  { %113 = dma.hbm_to_vmem [thread:$0]  %s3862_s10, 4096, %s108_s0, [#allocation13], %s3488_s2, %s3488_s2, %s3489_s27  }
  0x78   :  { %3466 = dma.done.wait [#allocation4], 256  }
  0x79   :  { %3467 = vsyncadd [#allocation4], 4294967040 }
  0x7a   :  { %3468 = dma.done.wait [#allocation7], 12544  }
  0x7b   :  { %3469 = vsyncadd [#allocation7], 4294954752 }
  0x7c   :  { %3470 = dma.done.wait [#allocation10], 4288  }
  0x7d   :  { %3471 = vsyncadd [#allocation10], 4294963008 }
  0x7e   :  { %3472 = dma.done.wait [#allocation13], 8192  }
  0x7f   :  { %3473 = vsyncadd [#allocation13], 4294959104  ;;  %v3491_v0 = vmov 0   ;;  %v2992_v1 = vld [vmem:[#allocation8 + $0x4] ss:$48 sps:$4 sm:$0xff]   ;;  %v143_v31 = vld [vmem:[#allocation3 + $0x8] sm:$0xff] }
  0x80   :  { %819 = vmatprep.mubr.bf16.mxu0 %v3491_v0  ;;  %862 = vmatprep.mubr.bf16.mxu1 %v3491_v0  ;;  %v2994_v2 = vld [vmem:[#allocation8] ss:$48 sps:$4 sm:$0xff]   ;;  %v2995_v3 = vld [vmem:[#allocation8 + $0x64] ss:$48 sps:$4 sm:$0xff]   ;;  %v3004_v6 = vld [vmem:[#allocation8 + $0xc] ss:$48 sps:$4 sm:$0xff]  }
  0x81   :  { %787 = vmatprep.subr.bf16.mxu0 %v2992_v1  ;;  %v2997_v4 = vld [vmem:[#allocation8 + $0x60] ss:$48 sps:$4 sm:$0xff]   ;;  %v2998_v5 = vld [vmem:[#allocation8 + $0xc4] ss:$48 sps:$4 sm:$0xff]   ;;  %v3008_v9 = vld [vmem:[#allocation8 + $0x8] ss:$48 sps:$4 sm:$0xff]   ;;  %830 = vmatprep.subr.bf16.mxu1 %v3004_v6 }
  0x82   :  { %788 = vmatpush1.bf16.msra.mxu0 %v2994_v2  ;;  %v3000_v7 = vld [vmem:[#allocation8 + $0xc0] ss:$48 sps:$4 sm:$0xff]   ;;  %v3001_v8 = vld [vmem:[#allocation8 + $0x124] ss:$48 sps:$4 sm:$0xff]   ;;  %v3010_v10 = vld [vmem:[#allocation8 + $0x6c] ss:$48 sps:$4 sm:$0xff]   ;;  %831 = vmatpush1.bf16.msra.mxu1 %v3008_v9 }
  0x83   :  { %789 = vmatprep.subr.bf16.mxu0 %v2995_v3  ;;  %v3003_v11 = vld [vmem:[#allocation8 + $0x120] ss:$48 sps:$4 sm:$0xff]   ;;  %832 = vmatprep.subr.bf16.mxu1 %v3010_v10  ;;  %v3014_v12 = vld [vmem:[#allocation8 + $0x68] ss:$48 sps:$4 sm:$0xff]   ;;  %v3016_v13 = vld [vmem:[#allocation8 + $0xcc] ss:$48 sps:$4 sm:$0xff]  }
  0x84   :  { %v3006_v14 = vld [vmem:[#allocation8 + $0x184] ss:$48 sps:$4 sm:$0xff]   ;;  %v3020_v15 = vld [vmem:[#allocation8 + $0xc8] ss:$48 sps:$4 sm:$0xff]   ;;  %v3022_v16 = vld [vmem:[#allocation8 + $0x12c] ss:$48 sps:$4 sm:$0xff]  }
  0x85   :  { %v3009_v17 = vld [vmem:[#allocation8 + $0x180] ss:$48 sps:$4 sm:$0xff]   ;;  %v3012_v18 = vld [vmem:[#allocation8 + $0x1e4] ss:$48 sps:$4 sm:$0xff]   ;;  %v3026_v19 = vld [vmem:[#allocation8 + $0x128] ss:$48 sps:$4 sm:$0xff]  }
  0x86   :  { %790 = vmatpush1.bf16.msra.mxu0 %v2997_v4  ;;  %833 = vmatpush1.bf16.msra.mxu1 %v3014_v12  ;;  %v3028_v20 = vld [vmem:[#allocation8 + $0x18c] ss:$48 sps:$4 sm:$0xff]   ;;  %v3015_v21 = vld [vmem:[#allocation8 + $0x1e0] ss:$48 sps:$4 sm:$0xff]   ;;  %v3018_v22 = vld [vmem:[#allocation8 + $0x244] ss:$48 sps:$4 sm:$0xff]  }
  0x87   :  { %791 = vmatprep.subr.bf16.mxu0 %v2998_v5  ;;  %834 = vmatprep.subr.bf16.mxu1 %v3016_v13  ;;  %v3030_v23 = vld [vmem:[#allocation8 + $0x188] ss:$48 sps:$4 sm:$0xff]   ;;  %v3034_v24 = vld [vmem:[#allocation8 + $0x1ec] ss:$48 sps:$4 sm:$0xff]   ;;  %v3021_v25 = vld [vmem:[#allocation8 + $0x240] ss:$48 sps:$4 sm:$0xff]  }
  0x88   :  { %v3024_v26 = vld [vmem:[#allocation8 + $0x2a4] ss:$48 sps:$4 sm:$0xff]   ;;  %v3027_v27 = vld [vmem:[#allocation8 + $0x2a0] ss:$48 sps:$4 sm:$0xff]   ;;  %v3036_v29 = vld [vmem:[#allocation8 + $0x1e8] ss:$48 sps:$4 sm:$0xff]  }
  0x89   :  { %v142_v28 = vld [vmem:[#allocation3] sm:$0xff]  ;;  %v3040_v30 = vld [vmem:[#allocation8 + $0x24c] ss:$48 sps:$4 sm:$0xff]   ;;  %v3042_v33 = vld [vmem:[#allocation8 + $0x248] ss:$48 sps:$4 sm:$0xff]   ;;  %vm3493_vm0 = vmmov 0  }
  0x8a   :  { %792 = vmatpush1.bf16.msra.mxu0 %v3000_v7  ;;  %835 = vmatpush1.bf16.msra.mxu1 %v3020_v15  ;;  %v3033_v32 = vld [vmem:[#allocation8 + $0x14] ss:$48 sps:$4 sm:$0xff]   ;;  %v3662_v34 = vpack.c.bf16 %v143_v31, %v142_v28  ;;  %v3046_v35 = vld [vmem:[#allocation8 + $0x2ac] ss:$48 sps:$4 sm:$0xff]   ;;  %v3031_v36 = vld [vmem:[#allocation8 + $0x10] ss:$48 sps:$4 sm:$0xff]  }
  0x8b   :  { %793 = vmatprep.subr.bf16.mxu0 %v3001_v8  ;;  %836 = vmatprep.subr.bf16.mxu1 %v3022_v16  ;;  %v3039_v37 = vld [vmem:[#allocation8 + $0x74] ss:$48 sps:$4 sm:$0xff]   ;;  %v3048_v38 = vld [vmem:[#allocation8 + $0x2a8] ss:$48 sps:$4 sm:$0xff]   ;;  %v3054_v39 = vld [vmem:[#allocation8 + $0x1c] ss:$48 sps:$4 sm:$0xff]  }
  0x8c   :  { %v3037_v40 = vld [vmem:[#allocation8 + $0x70] ss:$48 sps:$4 sm:$0xff]   ;;  %v3045_v41 = vld [vmem:[#allocation8 + $0xd4] ss:$48 sps:$4 sm:$0xff]   ;;  %v3052_v42 = vld [vmem:[#allocation8 + $0x18] ss:$48 sps:$4 sm:$0xff]  }
  0x8d   :  { %v3060_v43 = vld [vmem:[#allocation8 + $0x7c] ss:$48 sps:$4 sm:$0xff]   ;;  %v3043_v44 = vld [vmem:[#allocation8 + $0xd0] ss:$48 sps:$4 sm:$0xff]   ;;  %v3051_v45 = vld [vmem:[#allocation8 + $0x134] ss:$48 sps:$4 sm:$0xff]  }
  0x8e   :  { %794 = vmatpush1.bf16.msra.mxu0 %v3003_v11  ;;  %837 = vmatpush1.bf16.msra.mxu1 %v3026_v19  ;;  %v3049_v46 = vld [vmem:[#allocation8 + $0x130] ss:$48 sps:$4 sm:$0xff]   ;;  %v3058_v47 = vld [vmem:[#allocation8 + $0x78] ss:$48 sps:$4 sm:$0xff]   ;;  %v3066_v48 = vld [vmem:[#allocation8 + $0xdc] ss:$48 sps:$4 sm:$0xff]  }
  0x8f   :  { %795 = vmatprep.subr.bf16.mxu0 %v3006_v14  ;;  %838 = vmatprep.subr.bf16.mxu1 %v3028_v20  ;;  %v3057_v49 = vld [vmem:[#allocation8 + $0x194] ss:$48 sps:$4 sm:$0xff]   ;;  %v3064_v50 = vld [vmem:[#allocation8 + $0xd8] ss:$48 sps:$4 sm:$0xff]   ;;  %v3072_v51 = vld [vmem:[#allocation8 + $0x13c] ss:$48 sps:$4 sm:$0xff]  }
  0x90   :  { %v3055_v52 = vld [vmem:[#allocation8 + $0x190] ss:$48 sps:$4 sm:$0xff]   ;;  %v3063_v53 = vld [vmem:[#allocation8 + $0x1f4] ss:$48 sps:$4 sm:$0xff]   ;;  %v3070_v54 = vld [vmem:[#allocation8 + $0x138] ss:$48 sps:$4 sm:$0xff]  }
  0x91   :  { %v3078_v55 = vld [vmem:[#allocation8 + $0x19c] ss:$48 sps:$4 sm:$0xff]   ;;  %v3061_v56 = vld [vmem:[#allocation8 + $0x1f0] ss:$48 sps:$4 sm:$0xff]   ;;  %v3069_v57 = vld [vmem:[#allocation8 + $0x254] ss:$48 sps:$4 sm:$0xff]  }
  0x92   :  { %796 = vmatpush1.bf16.msra.mxu0 %v3009_v17  ;;  %839 = vmatpush1.bf16.msra.mxu1 %v3030_v23  ;;  %v3076_v58 = vld [vmem:[#allocation8 + $0x198] ss:$48 sps:$4 sm:$0xff]   ;;  %v3081_v59 = vld [vmem:[#allocation8 + $0x1fc] ss:$48 sps:$4 sm:$0xff]   ;;  %v3067_v60 = vld [vmem:[#allocation8 + $0x250] ss:$48 sps:$4 sm:$0xff]  }
  0x93   :  { %797 = vmatprep.subr.bf16.mxu0 %v3012_v18  ;;  %840 = vmatprep.subr.bf16.mxu1 %v3034_v24  ;;  %v3075_v61 = vld [vmem:[#allocation8 + $0x2b4] ss:$48 sps:$4 sm:$0xff]   ;;  %v3079_v62 = vld [vmem:[#allocation8 + $0x1f8] ss:$48 sps:$4 sm:$0xff]   ;;  %v3084_v63 = vld [vmem:[#allocation8 + $0x25c] ss:$48 sps:$4 sm:$0xff]  }
  0x94   :  { %v3073_v1 = vld [vmem:[#allocation8 + $0x2b0] ss:$48 sps:$4 sm:$0xff]   ;;  %v3082_v2 = vld [vmem:[#allocation8 + $0x258] ss:$48 sps:$4 sm:$0xff]   ;;  %v3087_v3 = vld [vmem:[#allocation8 + $0x2bc] ss:$48 sps:$4 sm:$0xff]  }
  0x95   :  { %v3085_v4 = vld [vmem:[#allocation8 + $0x2b8] ss:$48 sps:$4 sm:$0xff]   ;;  %v3090_v5 = vld [vmem:[#allocation8 + $0x24] ss:$48 sps:$4 sm:$0xff]   ;;  %v3088_v6 = vld [vmem:[#allocation8 + $0x20] ss:$48 sps:$4 sm:$0xff]  }
  0x96   :  { %798 = vmatpush1.bf16.msra.mxu0 %v3015_v21  ;;  %841 = vmatpush1.bf16.msra.mxu1 %v3036_v29  ;;  %v3093_v7 = vld [vmem:[#allocation8 + $0x84] ss:$48 sps:$4 sm:$0xff]   ;;  %v3091_v8 = vld [vmem:[#allocation8 + $0x80] ss:$48 sps:$4 sm:$0xff]   ;;  %v3492_v21 = vmov 0.0   ;;  %vm1098_vm1 = vcmask 130048  }
  0x97   :  { %799 = vmatprep.subr.bf16.mxu0 %v3018_v22  ;;  %842 = vmatprep.subr.bf16.mxu1 %v3040_v30  ;;  %v3094_v9 = vld [vmem:[#allocation8 + $0xe0] ss:$48 sps:$4 sm:$0xff]   ;;  %v3096_v10 = vld [vmem:[#allocation8 + $0xe4] ss:$48 sps:$4 sm:$0xff]   ;;  %v3112_v22 = vld [vmem:[#allocation8 + $0x28] ss:$48 sps:$4 sm:$0xff]  }
  0x98   :  { %v3099_v11 = vld [vmem:[#allocation8 + $0x144] ss:$48 sps:$4 sm:$0xff]   ;;  %v3097_v12 = vld [vmem:[#allocation8 + $0x140] ss:$48 sps:$4 sm:$0xff]   ;;  %v3114_v23 = vld [vmem:[#allocation8 + $0x2c] ss:$48 sps:$4 sm:$0xff]  }
  0x99   :  { %v3102_v13 = vld [vmem:[#allocation8 + $0x1a4] ss:$48 sps:$4 sm:$0xff]   ;;  %v3100_v14 = vld [vmem:[#allocation8 + $0x1a0] ss:$48 sps:$4 sm:$0xff]   ;;  %v3117_v24 = vld [vmem:[#allocation8 + $0x8c] ss:$48 sps:$4 sm:$0xff]  }
  0x9a   :  { %800 = vmatpush1.bf16.msra.mxu0 %v3021_v25  ;;  %843 = vmatpush1.bf16.msra.mxu1 %v3042_v33  ;;  %v3105_v15 = vld [vmem:[#allocation8 + $0x204] ss:$48 sps:$4 sm:$0xff]   ;;  %v3103_v16 = vld [vmem:[#allocation8 + $0x200] ss:$48 sps:$4 sm:$0xff]   ;;  %v3115_v25 = vld [vmem:[#allocation8 + $0x88] ss:$48 sps:$4 sm:$0xff]  }
  0x9b   :  { %801 = vmatprep.subr.bf16.mxu0 %v3024_v26  ;;  %844 = vmatprep.subr.bf16.mxu1 %v3046_v35  ;;  %v3108_v17 = vld [vmem:[#allocation8 + $0x264] ss:$48 sps:$4 sm:$0xff]   ;;  %v3106_v18 = vld [vmem:[#allocation8 + $0x260] ss:$48 sps:$4 sm:$0xff]   ;;  %v3120_v26 = vld [vmem:[#allocation8 + $0xec] ss:$48 sps:$4 sm:$0xff]  }
  0x9c   :  { %v3111_v19 = vld [vmem:[#allocation8 + $0x2c4] ss:$48 sps:$4 sm:$0xff]   ;;  %v3109_v20 = vld [vmem:[#allocation8 + $0x2c0] ss:$48 sps:$4 sm:$0xff]   ;;  %v3123_v28 = vld [vmem:[#allocation8 + $0x14c] ss:$48 sps:$4 sm:$0xff]  }
  0x9d   :  { %v3121_v29 = vld [vmem:[#allocation8 + $0x148] ss:$48 sps:$4 sm:$0xff]   ;;  %v3126_v30 = vld [vmem:[#allocation8 + $0x1ac] ss:$48 sps:$4 sm:$0xff]   ;;  %s3494_s15 = smov [#allocation15]  }
  0x9e   :  { %802 = vmatpush1.bf16.msra.mxu0 %v3027_v27  ;;  %845 = vmatpush1.bf16.msra.mxu1 %v3048_v38  ;;  %v3118_v27 = vld [vmem:[#allocation8 + $0xe8] ss:$48 sps:$4 sm:$0xff]   ;;  %v3132_v35 = vld [vmem:[#allocation8 + $0x26c] ss:$48 sps:$4 sm:$0xff]   ;;  %s2604_s0 = sshll.u32 %s3494_s15, 4  ;;  %s2605_s0 = int_to_ptr.vmem [resolvable:$true] %s2604_s0 }
  0x9f   :  { %873 = vmatprep.subr.bf16.mxu0 %v3033_v32  ;;  %916 = vmatprep.subr.bf16.mxu1 %v3054_v39  ;;  %v3124_v31 = vld [vmem:[#allocation8 + $0x1a8] ss:$48 sps:$4 sm:$0xff]   ;;  %v3129_v32 = vld [vmem:[#allocation8 + $0x20c] ss:$48 sps:$4 sm:$0xff]   ;;  %s3444_s30 = scalar_lea.vmem %s2605_s0, 256  ;;  %p3449_p1 = scmp.lt.s32.totalorder %s2605_s0, %s2605_s0 }
  0xa0   :  { %v3127_v33 = vld [vmem:[#allocation8 + $0x208] ss:$48 sps:$4 sm:$0xff]   ;;  %p3445_p0 = scmp.ne.s32.totalorder %s2605_s0, %s3444_s30  ;;  %p3450_p2 = scmp.lt.s32.totalorder %s3444_s30, %s3444_s30 }
  0xa1   :  { %820 = vmatmul.mubr.bf16.vlgmr.msra.gmra.mrb[0].mxu0 %v3662_v34  ;;  %863 = vmatmul.mubr.bf16.vlgmr.msra.gmra.mrb[0].mxu1 %v3662_v34 }
  0xa2   :  { %874 = vmatpush1.bf16.msra.mxu0 %v3031_v36  ;;  %905 = vmatprep.mubr.bf16.mxu0 %v3491_v0  ;;  %v3130_v36 = vld [vmem:[#allocation8 + $0x268] ss:$48 sps:$4 sm:$0xff]   ;;  %p3451_p3 = por %p3450_p2, %p3449_p1 }
  0xa3   :  { %875 = vmatprep.subr.bf16.mxu0 %v3039_v37  ;;  %917 = vmatpush1.bf16.msra.mxu1 %v3052_v42  ;;  %v247_v37 = vlaneseq  ;;  %v3135_v42 = vld [vmem:[#allocation8 + $0x2cc] ss:$48 sps:$4 sm:$0xff]  }
  0xa4   :  { %948 = vmatprep.mubr.bf16.mxu1 %v3491_v0  ;;  %918 = vmatprep.subr.bf16.mxu1 %v3060_v43  ;;  %p3452_p4 = pnand %p3451_p3, %p3445_p0 }
  0xa5   :  { %v248_v38 = vshrl.u32 %v247_v37, 7 }
  0xa6   :  { %876 = vmatpush1.bf16.msra.mxu0 %v3037_v40  ;;  %v243_v40 = vld [vmem:[#allocation9] sm:$0xff] }
  0xa7   :  { %877 = vmatprep.subr.bf16.mxu0 %v3045_v41  ;;  %919 = vmatpush1.bf16.msra.mxu1 %v3058_v47  ;;  %v3676_v39 = vsub.s32 0, %v248_v38  ;;  %v3133_v41 = vld [vmem:[#allocation8 + $0x2c8] ss:$48 sps:$4 sm:$0xff]   ;;  %v3678_v43 = vsub.s32 1, %v248_v38 }
  0xa8   :  { %920 = vmatprep.subr.bf16.mxu1 %v3066_v48  ;;  %v3685_v48 = vsub.s32 3, %v248_v38 }
  0xa9   :  { %v254_v47 = vrot.slane %v243_v40, %v3678_v43 }
  0xaa   :  { %878 = vmatpush1.bf16.msra.mxu0 %v3043_v44  ;;  %v250_v44 = vrot.slane %v243_v40, %v3676_v39 }
  0xab   :  { %879 = vmatprep.subr.bf16.mxu0 %v3051_v45  ;;  %921 = vmatpush1.bf16.msra.mxu1 %v3064_v50  ;;  %v3682_v45 = vsub.s32 2, %v248_v38 }
  0xac   :  { %922 = vmatprep.subr.bf16.mxu1 %v3072_v51 }
  0xae   :  { %880 = vmatpush1.bf16.msra.mxu0 %v3049_v46 }
  0xaf   :  { %881 = vmatprep.subr.bf16.mxu0 %v3057_v49  ;;  %923 = vmatpush1.bf16.msra.mxu1 %v3070_v54  ;;  %v258_v54 = vrot.slane %v243_v40, %v3682_v45 }
  0xb0   :  { %924 = vmatprep.subr.bf16.mxu1 %v3078_v55 }
  0xb2   :  { %882 = vmatpush1.bf16.msra.mxu0 %v3055_v52 }
  0xb3   :  { %883 = vmatprep.subr.bf16.mxu0 %v3063_v53  ;;  %925 = vmatpush1.bf16.msra.mxu1 %v3076_v58 }
  0xb4   :  { %926 = vmatprep.subr.bf16.mxu1 %v3081_v59 }
  0xb6   :  { %884 = vmatpush1.bf16.msra.mxu0 %v3061_v56 }
  0xb7   :  { %885 = vmatprep.subr.bf16.mxu0 %v3069_v57  ;;  %927 = vmatpush1.bf16.msra.mxu1 %v3079_v62  ;;  %v262_v57 = vrot.slane %v243_v40, %v3685_v48 }
  0xb8   :  { %928 = vmatprep.subr.bf16.mxu1 %v3084_v63 }
  0xba   :  { %886 = vmatpush1.bf16.msra.mxu0 %v3067_v60 }
  0xbb   :  { %887 = vmatprep.subr.bf16.mxu0 %v3075_v61  ;;  %929 = vmatpush1.bf16.msra.mxu1 %v3082_v2 }
  0xbc   :  { %930 = vmatprep.subr.bf16.mxu1 %v3087_v3 }
  0xbe   :  { %888 = vmatpush1.bf16.msra.mxu0 %v3073_v1 }
  0xbf   :  { %931 = vmatpush1.bf16.msra.mxu1 %v3085_v4  ;;  %959 = vmatprep.subr.bf16.mxu0 %v3090_v5 }
  0xc0   :  { %1002 = vmatprep.subr.bf16.mxu1 %v3114_v23 }
  0xc1   :  { %906 = vmatmul.mubr.bf16.vlgmr.msra.gmra.mrb[4].mxu0 %v3662_v34 }
  0xc2   :  { %991 = vmatprep.mubr.bf16.mxu0 %v3491_v0  ;;  %949 = vmatmul.mubr.bf16.vlgmr.msra.gmra.mrb[4].mxu1 %v3662_v34 }
  0xc3   :  { %1034 = vmatprep.mubr.bf16.mxu1 %v3491_v0  ;;  %960 = vmatpush1.bf16.msra.mxu0 %v3088_v6  ;;  %v265_v6 = vsub.s32 4, %v248_v38 }
  0xc4   :  { %961 = vmatprep.subr.bf16.mxu0 %v3093_v7  ;;  %1003 = vmatpush1.bf16.msra.mxu1 %v3112_v22  ;;  %v269_v7 = vsub.s32 5, %v248_v38 }
  0xc5   :  { %1004 = vmatprep.subr.bf16.mxu1 %v3117_v24 }
  0xc7   :  { %962 = vmatpush1.bf16.msra.mxu0 %v3091_v8  ;;  %v266_v8 = vrot.slane %v243_v40, %v265_v6 }
  0xc8   :  { %963 = vmatprep.subr.bf16.mxu0 %v3096_v10  ;;  %1005 = vmatpush1.bf16.msra.mxu1 %v3115_v25 }
  0xc9   :  { %1006 = vmatprep.subr.bf16.mxu1 %v3120_v26 }
  0xcb   :  { %964 = vmatpush1.bf16.msra.mxu0 %v3094_v9  ;;  %v273_v9 = vsub.s32 6, %v248_v38 }
  0xcc   :  { %965 = vmatprep.subr.bf16.mxu0 %v3099_v11  ;;  %1007 = vmatpush1.bf16.msra.mxu1 %v3118_v27  ;;  %v270_v11 = vrot.slane %v243_v40, %v269_v7 }
  0xcd   :  { %1008 = vmatprep.subr.bf16.mxu1 %v3123_v28 }
  0xcf   :  { %966 = vmatpush1.bf16.msra.mxu0 %v3097_v12  ;;  %v277_v12 = vsub.s32 7, %v248_v38 }
  0xd0   :  { %967 = vmatprep.subr.bf16.mxu0 %v3102_v13  ;;  %1009 = vmatpush1.bf16.msra.mxu1 %v3121_v29 }
  0xd1   :  { %1010 = vmatprep.subr.bf16.mxu1 %v3126_v30  ;;  %v278_v22 = vrot.slane %v243_v40, %v277_v12 }
  0xd3   :  { %968 = vmatpush1.bf16.msra.mxu0 %v3100_v14 }
  0xd4   :  { %969 = vmatprep.subr.bf16.mxu0 %v3105_v15  ;;  %1011 = vmatpush1.bf16.msra.mxu1 %v3124_v31 }
  0xd5   :  { %1012 = vmatprep.subr.bf16.mxu1 %v3129_v32 }
  0xd7   :  { %970 = vmatpush1.bf16.msra.mxu0 %v3103_v16 }
  0xd8   :  { %971 = vmatprep.subr.bf16.mxu0 %v3108_v17  ;;  %1013 = vmatpush1.bf16.msra.mxu1 %v3127_v33 }
  0xd9   :  { %1014 = vmatprep.subr.bf16.mxu1 %v3132_v35 }
  0xdb   :  { %972 = vmatpush1.bf16.msra.mxu0 %v3106_v18  ;;  %v274_v18 = vrot.slane %v243_v40, %v273_v9 }
  0xdc   :  { %973 = vmatprep.subr.bf16.mxu0 %v3111_v19  ;;  %1015 = vmatpush1.bf16.msra.mxu1 %v3130_v36  ;;  %v3701_v36 = vld [vmem:[#allocation9 + $0x8] sm:$0xf] }
  0xdd   :  { %1016 = vmatprep.subr.bf16.mxu1 %v3135_v42  ;;  %v282_v37 = vrot.slane %v3701_v36, %v3676_v39  ;;  %v286_v38 = vrot.slane %v3701_v36, %v3678_v43 }
  0xdf   :  { %974 = vmatpush1.bf16.msra.mxu0 %v3109_v20 }
  0xe0   :  { %2925 = vmatprep.subr.bf16.mxu0 %v3492_v21  ;;  %1017 = vmatpush1.bf16.msra.mxu1 %v3133_v41 }
  0xe1   :  { %2931 = vmatprep.subr.bf16.mxu1 %v3492_v21 }
  0xe2   :  { %992 = vmatmul.mubr.bf16.vlgmr.msra.gmra.mrb[8].mxu0 %v3662_v34 }
  0xe3   :  { %2927 = vmatprep.mubr.msk.bf16.mxu0 %vm3493_vm0, %v3492_v21  ;;  %1035 = vmatmul.mubr.bf16.vlgmr.msra.gmra.mrb[8].mxu1 %v3662_v34 }
  0xe4   :  { %2933 = vmatprep.mubr.msk.bf16.mxu1 %vm3493_vm0, %v3492_v21 }
 0x174   :  { %v821_v46 = vpop.f32.mrb[0].mxu0  ;;  %v864_v60 = vpop.f32.mrb[0].mxu1 }
 0x175   :  { %v822_v49 = vadd.f32 %v821_v46, %v250_v44  ;;  %v823_v50 = vpop.f32.mrb[1].mxu0  ;;  %v865_v61 = vadd.f32 %v864_v60, %v258_v54  ;;  %v866_v62 = vpop.f32.mrb[1].mxu1 }
 0x176   :  { %v825_v51 = vpop.f32.mrb[2].mxu0  ;;  %v824_v55 = vadd.f32 %v823_v50, %v254_v47  ;;  %v867_v34 = vadd.f32 %v866_v62, %v262_v57  ;;  %v868_v63 = vpop.f32.mrb[2].mxu1 }
 0x177   :  { %v826_v52 = vadd.f32 %v825_v51, %v250_v44  ;;  %v827_v53 = vpop.f32.mrb[3].mxu0  ;;  %v869_v1 = vadd.f32 %v868_v63, %v258_v54  ;;  %v870_v2 = vpop.f32.mrb[3].mxu1 }
 0x178   :  { %v828_v56 = vadd.f32 %v827_v53, %v254_v47  ;;  %v871_v3 = vadd.f32 %v870_v2, %v262_v57  ;;  %v144_v53 = vld [vmem:[#allocation6] sm:$0xff] }
 0x179   :  { %v1045_v58 = vpack.c.bf16 %v826_v52, %v822_v49  ;;  %v1047_v4 = vpack.c.bf16 %v869_v1, %v865_v61 }
 0x17a   :  { %v1046_v59 = vpack.c.bf16 %v828_v56, %v824_v55  ;;  %v1048_v5 = vpack.c.bf16 %v871_v3, %v867_v34  ;;  %v145_v55 = vld [vmem:[#allocation6 + $0x8] sm:$0xff] }
 0x194   :  { %v907_v10 = vpop.f32.mrb[4].mxu0 }
 0x195   :  { %v909_v13 = vpop.f32.mrb[5].mxu0  ;;  %v908_v15 = vadd.f32 %v907_v10, %v266_v8  ;;  %v950_v25 = vpop.f32.mrb[4].mxu1 }
 0x196   :  { %v911_v14 = vpop.f32.mrb[6].mxu0  ;;  %v910_v19 = vadd.f32 %v909_v13, %v270_v11  ;;  %v951_v26 = vadd.f32 %v950_v25, %v274_v18  ;;  %v952_v27 = vpop.f32.mrb[5].mxu1 }
 0x197   :  { %v912_v16 = vadd.f32 %v911_v14, %v266_v8  ;;  %v913_v17 = vpop.f32.mrb[7].mxu0  ;;  %v953_v28 = vadd.f32 %v952_v27, %v278_v22  ;;  %v954_v29 = vpop.f32.mrb[6].mxu1 }
 0x198   :  { %v914_v20 = vadd.f32 %v913_v17, %v270_v11  ;;  %v955_v30 = vadd.f32 %v954_v29, %v274_v18  ;;  %v956_v31 = vpop.f32.mrb[7].mxu1 }
 0x199   :  { %v1049_v23 = vpack.c.bf16 %v912_v16, %v908_v15  ;;  %v957_v32 = vadd.f32 %v956_v31, %v278_v22 }
 0x19a   :  { %v1050_v24 = vpack.c.bf16 %v914_v20, %v910_v19  ;;  %v1051_v33 = vpack.c.bf16 %v955_v30, %v951_v26 }
 0x19b   :  { %2926 = vmatpush3.bf16.xpose.msra.mxu0 %v1049_v23  ;;  %v1052_v35 = vpack.c.bf16 %v957_v32, %v953_v28 }
 0x19c   :  { %2937 = vmatprep.subr.bf16.mxu0 %v3492_v21 }
 0x1a2   :  { %2928 = vmatmul.mubr.bf16.vlgmr.msra.gmra.mrb[12].mxu0 %v1045_v58 }
 0x1a3   :  { %2938 = vmatpush3.bf16.xpose.msra.mxu0 %v1050_v24  ;;  %2939 = vmatprep.mubr.msk.bf16.mxu0 %vm3493_vm0, %v3492_v21 }
 0x1a4   :  { %2949 = vmatprep.subr.bf16.mxu0 %v3492_v21 }
 0x1aa   :  { %2940 = vmatmul.mubr.bf16.vlgmr.msra.gmra.mrb[16].mxu0 %v1046_v59 }
 0x1ab   :  { %2950 = vmatpush3.bf16.xpose.msra.mxu0 %v1051_v33  ;;  %2951 = vmatprep.mubr.msk.bf16.mxu0 %vm3493_vm0, %v3492_v21 }
 0x1ac   :  { %2961 = vmatprep.subr.bf16.mxu0 %v3492_v21 }
 0x1b2   :  { %2952 = vmatmul.mubr.bf16.vlgmr.msra.gmra.mrb[20].mxu0 %v1047_v4 }
 0x1b3   :  { %2962 = vmatpush3.bf16.xpose.msra.mxu0 %v1052_v35  ;;  %2963 = vmatprep.mubr.msk.bf16.mxu0 %vm3493_vm0, %v3492_v21 }
 0x1b5   :  { %v993_v40 = vpop.f32.mrb[8].mxu0 }
 0x1b6   :  { %v994_v41 = vadd.f32 %v993_v40, %v282_v37  ;;  %v995_v42 = vpop.f32.mrb[9].mxu0 }
 0x1b7   :  { %v3707_v44 = vadd.f32 %v995_v42, %v286_v38  ;;  %v997_v46 = vpop.f32.mrb[10].mxu0 }
 0x1b8   :  { %v998_v47 = vadd.f32 %v997_v46, %v282_v37  ;;  %v999_v49 = vpop.f32.mrb[11].mxu0 }
 0x1b9   :  { %v3709_v50 = vadd.f32 %v999_v49, %v286_v38 }
 0x1ba   :  { %2964 = vmatmul.mubr.bf16.vlgmr.msra.gmra.mrb[24].mxu0 %v1048_v5  ;;  %v1053_v51 = vpack.c.bf16 %v998_v47, %v994_v41 }
 0x1bb   :  { %v1054_v52 = vpack.c.bf16 %v3709_v50, %v3707_v44 }
 0x1bc   :  { %2932 = vmatpush3.bf16.msra.mxu1 %v1053_v51 }
 0x1bd   :  { %2943 = vmatprep.subr.bf16.mxu1 %v3492_v21 }
 0x275   :  { %v1091_v54 = vpop.f32.mrb[12].mxu0 }
 0x276   :  { %v1092_v56 = vadd.f32 %v1091_v54, %v144_v53  ;;  %v2929_v57 = vpop.f32.mrb[13].mxu0 }
 0x277   :  { %v1094_v58 = vpop.f32.mrb[14].mxu0 }
 0x278   :  { %v1095_v59 = vadd.f32 %v1094_v58, %v145_v55  ;;  %v2930_v60 = vpop.f32.mrb[15].mxu0  ;;  %v1099_v61 = vsel %vm1098_vm1, %v1092_v56, -inf }
 0x279   :  { %1100 = vmax.xlane.f32.xlu0 %v1099_v61 }
 0x27a   :  { %v1102_v62 = vsel %vm1098_vm1, %v1095_v59, -inf }
 0x27d   :  { %1103 = vmax.xlane.f32.xlu0 %v1102_v62  ;;  %v1202_v34 = vpop.f32.mrb[16].mxu0 }
 0x27e   :  { %v1203_v63 = vadd.f32 %v1202_v34, %v144_v53  ;;  %v2941_v1 = vpop.f32.mrb[17].mxu0 }
 0x27f   :  { %v1205_v2 = vpop.f32.mrb[18].mxu0 }
 0x280   :  { %v1206_v3 = vadd.f32 %v1205_v2, %v145_v55  ;;  %v2942_v4 = vpop.f32.mrb[19].mxu0  ;;  %v1209_v5 = vsel %vm1098_vm1, %v1203_v63, -inf }
 0x281   :  { %1210 = vmax.xlane.f32.xlu1 %v1209_v5 }
 0x282   :  { %v1212_v6 = vsel %vm1098_vm1, %v1206_v3, -inf }
 0x285   :  { %1213 = vmax.xlane.f32.xlu1 %v1212_v6  ;;  %v1312_v7 = vpop.f32.mrb[20].mxu0 }
 0x286   :  { %v1313_v8 = vadd.f32 %v1312_v7, %v144_v53  ;;  %v2953_v9 = vpop.f32.mrb[21].mxu0 }
 0x287   :  { %v1315_v10 = vpop.f32.mrb[22].mxu0  ;;  %v1036_v9 = vpop.f32.mrb[8].mxu1 }
 0x288   :  { %v1316_v11 = vadd.f32 %v1315_v10, %v145_v55  ;;  %v2954_v12 = vpop.f32.mrb[23].mxu0  ;;  %v1319_v13 = vsel %vm1098_vm1, %v1313_v8, -inf  ;;  %v1038_v10 = vpop.f32.mrb[9].mxu1 }
 0x289   :  { %1320 = vmax.xlane.f32.xlu0 %v1319_v13  ;;  %v294_v12 = vrot.slane %v3701_v36, %v3685_v48  ;;  %v1040_v13 = vpop.f32.mrb[10].mxu1 }
 0x28a   :  { %v1322_v14 = vsel %vm1098_vm1, %v1316_v11, -inf }
 0x28b   :  { %1323 = vmax.xlane.f32.xlu1 %v1322_v14 }
 0x28d   :  { %v1422_v15 = vpop.f32.mrb[24].mxu0 }
 0x28e   :  { %v1423_v16 = vadd.f32 %v1422_v15, %v144_v53  ;;  %v2965_v17 = vpop.f32.mrb[25].mxu0  ;;  %v3758_v15 = vadd.f32 %v1038_v10, %v294_v12  ;;  %v3153_v10 = vld [vmem:[#allocation11 + $0xd0] sm:$0xff]  }
 0x28f   :  { %v1425_v18 = vpop.f32.mrb[26].mxu0 }
 0x290   :  { %v1426_v19 = vadd.f32 %v1425_v18, %v145_v55  ;;  %v2966_v20 = vpop.f32.mrb[27].mxu0  ;;  %v1429_v22 = vsel %vm1098_vm1, %v1423_v16, -inf }
 0x291   :  { %1430 = vmax.xlane.f32.xlu0 %v1429_v22  ;;  %v3136_v22 = vld [vmem:[#allocation11 + $0x40] sm:$0xff]  }
 0x292   :  { %v1432_v23 = vsel %vm1098_vm1, %v1426_v19, -inf  ;;  %2837 = vmatprep.subr.bf16.mxu0 %v3136_v22  ;;  %v3167_v22 = vld [vmem:[#allocation11 + $0xb8] sm:$0xff]  }
 0x293   :  { %1433 = vmax.xlane.f32.xlu1 %v1432_v23  ;;  %v3137_v23 = vld [vmem:[#allocation11] sm:$0xff]  }
 0x294   :  { %2838 = vmatpush3.bf16.msra.mxu0 %v3137_v23 }
 0x306   :  { %v1101_v24 = vpop.xlane.xlu0 %1100 }
 0x307   :  { %v1105_v25 = vsub.f32 %v1092_v56, %v1101_v24  ;;  %v3138_v24 = vld [vmem:[#allocation11 + $0x48] sm:$0xff]  }
 0x308   :  { %2839 = vmatprep.subr.bf16.mxu0 %v3138_v24 }
 0x309   :  { %v1107_v26 = vmul.f32 1.442695, %v1105_v25  ;;  %v3139_v25 = vld [vmem:[#allocation11 + $0x8] sm:$0xff]  }
 0x30a   :  { %v1104_v27 = vpop.xlane.xlu0 %1103  ;;  %2840 = vmatpush3.bf16.msra.mxu0 %v3139_v25 }
 0x30b   :  { %3248 = vpow2.f32 %v1107_v26  ;;  %v1106_v28 = vsub.f32 %v1095_v59, %v1104_v27  ;;  %v3141_v26 = vld [vmem:[#allocation11 + $0x10] sm:$0xff]   ;;  %v3142_v27 = vld [vmem:[#allocation11 + $0x58] sm:$0xff]  }
 0x30d   :  { %v1109_v29 = vmul.f32 1.442695, %v1106_v28  ;;  %v3143_v28 = vld [vmem:[#allocation11 + $0x18] sm:$0xff]  }
 0x30e   :  { %v1211_v30 = vpop.xlane.xlu1 %1210 }
 0x30f   :  { %3250 = vpow2.f32 %v1109_v29  ;;  %v1215_v31 = vsub.f32 %v1203_v63, %v1211_v30  ;;  %v3144_v29 = vld [vmem:[#allocation11 + $0x60] sm:$0xff]  }
 0x310   :  { %v3146_v30 = vld [vmem:[#allocation11 + $0x20] sm:$0xff]  }
 0x311   :  { %v1217_v32 = vmul.f32 1.442695, %v1215_v31 }
 0x312   :  { %v1214_v33 = vpop.xlane.xlu1 %1213 }
 0x313   :  { %3252 = vpow2.f32 %v1217_v32  ;;  %v1216_v35 = vsub.f32 %v1206_v3, %v1214_v33 }
 0x315   :  { %v3722_v37 = vpop.eup %3248  ;;  %v1219_v38 = vmul.f32 1.442695, %v1216_v35 }
 0x316   :  { %v1321_v40 = vpop.xlane.xlu0 %1320  ;;  %v1111_v41 = vsel %vm1098_vm1, %v3722_v37, 0.0 }
 0x317   :  { %3254 = vpow2.f32 %v1219_v38  ;;  %v1325_v42 = vsub.f32 %v1313_v8, %v1321_v40  ;;  %1112 = vadd.xlane.f32.xlu0 %v1111_v41 }
 0x318   :  { %v1324_v46 = vpop.xlane.xlu1 %1323 }
 0x319   :  { %v3726_v47 = vpop.eup %3250  ;;  %v1327_v49 = vmul.f32 1.442695, %v1325_v42  ;;  %v1326_v51 = vsub.f32 %v1316_v11, %v1324_v46  ;;  %v290_v11 = vrot.slane %v3701_v36, %v3682_v45  ;;  %v3140_v36 = vld [vmem:[#allocation11 + $0x50] sm:$0xff]  }
 0x31a   :  { %v1114_v53 = vsel %vm1098_vm1, %v3726_v47, 0.0  ;;  %2841 = vmatprep.subr.bf16.mxu0 %v3140_v36 }
 0x31b   :  { %3256 = vpow2.f32 %v1327_v49  ;;  %v1329_v54 = vmul.f32 1.442695, %v1326_v51  ;;  %1115 = vadd.xlane.f32.xlu1 %v1114_v53  ;;  %v1037_v14 = vadd.f32 %v1036_v9, %v290_v11  ;;  %v1041_v17 = vadd.f32 %v1040_v13, %v290_v11  ;;  %2842 = vmatpush3.bf16.msra.mxu0 %v3141_v26  ;;  %v3152_v9 = vld [vmem:[#allocation11 + $0x70] sm:$0xff]   ;;  %v3157_v11 = vld [vmem:[#allocation11 + $0xd8] sm:$0xff]  }
 0x31c   :  { %2843 = vmatprep.subr.bf16.mxu0 %v3142_v27  ;;  %v3159_v13 = vld [vmem:[#allocation11 + $0x98] sm:$0xff]  }
 0x31d   :  { %v3730_v55 = vpop.eup %3252  ;;  %3258 = vpow2.f32 %v1329_v54 }
 0x31e   :  { %v1431_v56 = vpop.xlane.xlu0 %1430  ;;  %v1221_v57 = vsel %vm1098_vm1, %v3730_v55, 0.0 }
 0x31f   :  { %v1435_v58 = vsub.f32 %v1423_v16, %v1431_v56  ;;  %1222 = vadd.xlane.f32.xlu0 %v1221_v57  ;;  %v1042_v16 = vpop.f32.mrb[11].mxu1  ;;  %2844 = vmatpush3.bf16.msra.mxu0 %v3143_v28 }
 0x320   :  { %v1434_v59 = vpop.xlane.xlu1 %1433  ;;  %v3760_v18 = vadd.f32 %v1042_v16, %v294_v12  ;;  %2845 = vmatprep.subr.bf16.mxu0 %v3144_v29  ;;  %v3158_v12 = vld [vmem:[#allocation11 + $0x38] sm:$0xff]   ;;  %v3162_v16 = vld [vmem:[#allocation11 + $0xe8] sm:$0xff]  }
 0x321   :  { %v3734_v60 = vpop.eup %3254  ;;  %v1437_v61 = vmul.f32 1.442695, %v1435_v58  ;;  %v1436_v62 = vsub.f32 %v1426_v19, %v1434_v59  ;;  %v1055_v19 = vpack.c.bf16 %v1041_v17, %v1037_v14  ;;  %v3160_v14 = vld [vmem:[#allocation11 + $0xe0] sm:$0xff]   ;;  %v3163_v17 = vld [vmem:[#allocation11 + $0xa8] sm:$0xff]  }
 0x322   :  { %v1224_v34 = vsel %vm1098_vm1, %v3734_v60, 0.0  ;;  %v1056_v20 = vpack.c.bf16 %v3760_v18, %v3758_v15  ;;  %v3161_v15 = vld [vmem:[#allocation11 + $0xa0] sm:$0xff]   ;;  %v3164_v18 = vld [vmem:[#allocation11 + $0xf0] sm:$0xff]  }
 0x323   :  { %3260 = vpow2.f32 %v1437_v61  ;;  %v1439_v63 = vmul.f32 1.442695, %v1436_v62  ;;  %1225 = vadd.xlane.f32.xlu1 %v1224_v34  ;;  %2846 = vmatpush3.bf16.msra.mxu0 %v3146_v30 }
 0x325   :  { %v3738_v1 = vpop.eup %3256  ;;  %3262 = vpow2.f32 %v1439_v63 }
 0x326   :  { %v1331_v2 = vsel %vm1098_vm1, %v3738_v1, 0.0 }
 0x327   :  { %v3742_v3 = vpop.eup %3258  ;;  %1332 = vadd.xlane.f32.xlu0 %v1331_v2  ;;  %v3147_v2 = vld [vmem:[#allocation11 + $0x80] sm:$0xff]  }
 0x328   :  { %v1334_v4 = vsel %vm1098_vm1, %v3742_v3, 0.0 }
 0x329   :  { %1335 = vadd.xlane.f32.xlu1 %v1334_v4  ;;  %v3149_v4 = vld [vmem:[#allocation11 + $0xc8] sm:$0xff]  }
 0x32d   :  { %v3746_v5 = vpop.eup %3260 }
 0x32e   :  { %v1441_v6 = vsel %vm1098_vm1, %v3746_v5, 0.0 }
 0x32f   :  { %v3750_v7 = vpop.eup %3262  ;;  %1442 = vadd.xlane.f32.xlu0 %v1441_v6  ;;  %v3150_v6 = vld [vmem:[#allocation11 + $0x28] sm:$0xff]  }
 0x330   :  { %v1444_v8 = vsel %vm1098_vm1, %v3750_v7, 0.0 }
 0x331   :  { %1445 = vadd.xlane.f32.xlu1 %v1444_v8  ;;  %v3151_v8 = vld [vmem:[#allocation11 + $0x88] sm:$0xff]  }
 0x3a4   :  { %v1113_v31 = vpop.xlane.xlu0 %1112 }
 0x3a5   :  { %3264 = vrcp.f32 %v1113_v31 }
 0x3a8   :  { %v1116_v32 = vpop.xlane.xlu1 %1115 }
 0x3a9   :  { %3266 = vrcp.f32 %v1116_v32 }
 0x3ac   :  { %v1223_v33 = vpop.xlane.xlu0 %1222 }
 0x3ad   :  { %3268 = vrcp.f32 %v1223_v33 }
 0x3af   :  { %v3265_v38 = vpop.eup %3264 }
 0x3b0   :  { %v1226_v35 = vpop.xlane.xlu1 %1225  ;;  %v1119_v41 = vmul.f32 %v3265_v38, %v3722_v37 }
 0x3b1   :  { %3270 = vrcp.f32 %v1226_v35 }
 0x3b3   :  { %v3267_v40 = vpop.eup %3266 }
 0x3b4   :  { %v1120_v42 = vmul.f32 %v3267_v40, %v3726_v47  ;;  %v1333_v46 = vpop.xlane.xlu0 %1332 }
 0x3b5   :  { %3272 = vrcp.f32 %v1333_v46 }
 0x3b6   :  { %v1336_v49 = vpop.xlane.xlu1 %1335  ;;  %v1121_v51 = vpack.c.bf16 %v1120_v42, %v1119_v41 }
 0x3b7   :  { %3274 = vrcp.f32 %v1336_v49  ;;  %v3269_v53 = vpop.eup %3268 }
 0x3b8   :  { %2934 = vmatmul.mubr.msk.bf16.vlgmr.msra.gmra.mrb[12].mxu1 %vm1098_vm1, %v1121_v51  ;;  %v1229_v47 = vmul.f32 %v3269_v53, %v3730_v55  ;;  %v3168_v53 = vld [vmem:[#allocation12] ss:$16 sps:$4 sm:$0xff]  }
 0x3b9   :  { %2944 = vmatpush3.bf16.msra.mxu1 %v1054_v52  ;;  %2945 = vmatprep.mubr.msk.bf16.mxu1 %vm3493_vm0, %v3492_v21 }
 0x3ba   :  { %2955 = vmatprep.subr.bf16.mxu1 %v3492_v21 }
 0x3bb   :  { %v3271_v37 = vpop.eup %3270 }
 0x3bc   :  { %v1230_v54 = vmul.f32 %v3271_v37, %v3734_v60  ;;  %v1443_v56 = vpop.xlane.xlu0 %1442  ;;  %v3145_v60 = vld [vmem:[#allocation11 + $0xc0] sm:$0xff]  }
 0x3bd   :  { %3276 = vrcp.f32 %v1443_v56  ;;  %v3170_v37 = vld [vmem:[#allocation12 + $0x4] ss:$16 sps:$4 sm:$0xff]  }
 0x3be   :  { %v1446_v57 = vpop.xlane.xlu1 %1445  ;;  %v1231_v58 = vpack.c.bf16 %v1230_v54, %v1229_v47  ;;  %v3171_v47 = vld [vmem:[#allocation12 + $0x8] ss:$16 sps:$4 sm:$0xff]   ;;  %v3173_v54 = vld [vmem:[#allocation12 + $0xc] ss:$16 sps:$4 sm:$0xff]  }
 0x3bf   :  { %3278 = vrcp.f32 %v1446_v57  ;;  %v3273_v59 = vpop.eup %3272 }
 0x3c0   :  { %2946 = vmatmul.mubr.msk.bf16.vlgmr.msra.gmra.mrb[16].mxu1 %vm1098_vm1, %v1231_v58  ;;  %v1339_v52 = vmul.f32 %v3273_v59, %v3738_v1 }
 0x3c1   :  { %v3275_v44 = vpop.eup %3274  ;;  %2956 = vmatpush3.bf16.msra.mxu1 %v1055_v19  ;;  %2957 = vmatprep.mubr.msk.bf16.mxu1 %vm3493_vm0, %v3492_v21  ;;  %v3165_v19 = vld [vmem:[#allocation11 + $0xb0] sm:$0xff]  }
 0x3c2   :  { %v1340_v50 = vmul.f32 %v3275_v44, %v3742_v3  ;;  %2967 = vmatprep.subr.bf16.mxu1 %v3492_v21  ;;  %v3148_v3 = vld [vmem:[#allocation11 + $0x68] sm:$0xff]  }
 0x3c3   :  { %2847 = vmatprep.subr.bf16.mxu0 %v3148_v3 }
 0x3c4   :  { %v1341_v55 = vpack.c.bf16 %v1340_v50, %v1339_v52  ;;  %2848 = vmatpush3.bf16.msra.mxu0 %v3150_v6  ;;  %v2719_v52 = vld [vmem:[%s3857_s5] ss:$0 sm:$0xff] }
 0x3c5   :  { %2849 = vmatprep.subr.bf16.mxu0 %v3152_v9 }
 0x3c7   :  { %v3277_v61 = vpop.eup %3276 }
 0x3c8   :  { %2958 = vmatmul.mubr.msk.bf16.vlgmr.msra.gmra.mrb[20].mxu1 %vm1098_vm1, %v1341_v55  ;;  %v1449_v63 = vmul.f32 %v3277_v61, %v3746_v5  ;;  %v3156_v5 = vld [vmem:[#allocation11 + $0x78] sm:$0xff]  }
 0x3c9   :  { %v3279_v62 = vpop.eup %3278  ;;  %2968 = vmatpush3.bf16.msra.mxu1 %v1056_v20  ;;  %2969 = vmatprep.mubr.msk.bf16.mxu1 %vm3493_vm0, %v3492_v21  ;;  %v3154_v21 = vld [vmem:[#allocation11 + $0x30] sm:$0xff]   ;;  %v3166_v20 = vld [vmem:[#allocation11 + $0xf8] sm:$0xff]  }
 0x3ca   :  { %v1450_v34 = vmul.f32 %v3279_v62, %v3750_v7  ;;  %2859 = vmatprep.subr.bf16.mxu1 %v3145_v60  ;;  %v3155_v7 = vld [vmem:[#allocation11 + $0x90] sm:$0xff]   ;;  %2850 = vmatpush3.bf16.msra.mxu0 %v3154_v21 }
 0x3cb   :  { %2851 = vmatprep.subr.bf16.mxu0 %v3156_v5  ;;  %v3179_v5 = vld [vmem:[#allocation12 + $0x2c] ss:$16 sps:$4 sm:$0xff]  }
 0x3cc   :  { %v1451_v1 = vpack.c.bf16 %v1450_v34, %v1449_v63 }
 0x3ce   :  { %2852 = vmatpush3.bf16.msra.mxu0 %v3158_v12  ;;  %v3177_v12 = vld [vmem:[#allocation12 + $0x28] ss:$16 sps:$4 sm:$0xff]  }
 0x3cf   :  { %2108 = vmatprep.subr.bf16.mxu0 %v3170_v37 }
 0x3d0   :  { %2970 = vmatmul.mubr.msk.bf16.vlgmr.msra.gmra.mrb[24].mxu1 %vm1098_vm1, %v1451_v1 }
 0x3d1   :  { %2860 = vmatpush3.bf16.msra.mxu1 %v3147_v2 }
 0x3d2   :  { %2861 = vmatprep.subr.bf16.mxu1 %v3149_v4  ;;  %v3288_v4 = vld [vmem:[#allocation3] sm:$0xff] }
 0x3d5   :  { %2862 = vmatpush3.bf16.msra.mxu1 %v3151_v8  ;;  %v3289_v8 = vld [vmem:[#allocation3 + $0x8] sm:$0xff] }
 0x3d6   :  { %2863 = vmatprep.subr.bf16.mxu1 %v3153_v10 }
 0x3d9   :  { %2864 = vmatpush3.bf16.msra.mxu1 %v3155_v7  ;;  %v3176_v7 = vld [vmem:[#allocation12 + $0x24] ss:$16 sps:$4 sm:$0xff]  }
 0x3da   :  { %2865 = vmatprep.subr.bf16.mxu1 %v3157_v11  ;;  %v3174_v11 = vld [vmem:[#allocation12 + $0x20] ss:$16 sps:$4 sm:$0xff]  }
 0x3dd   :  { %2866 = vmatpush3.bf16.msra.mxu1 %v3159_v13  ;;  %v3182_v13 = vld [vmem:[#allocation12 + $0x44] ss:$16 sps:$4 sm:$0xff]  }
 0x3de   :  { %2867 = vmatprep.subr.bf16.mxu1 %v3160_v14  ;;  %v3185_v14 = vld [vmem:[#allocation12 + $0x4c] ss:$16 sps:$4 sm:$0xff]  }
 0x3e1   :  { %2868 = vmatpush3.bf16.msra.mxu1 %v3161_v15  ;;  %v3180_v15 = vld [vmem:[#allocation12 + $0x40] ss:$16 sps:$4 sm:$0xff]  }
 0x3e2   :  { %2869 = vmatprep.subr.bf16.mxu1 %v3162_v16  ;;  %v3183_v16 = vld [vmem:[#allocation12 + $0x48] ss:$16 sps:$4 sm:$0xff]  }
 0x3e5   :  { %2870 = vmatpush3.bf16.msra.mxu1 %v3163_v17  ;;  %v3188_v17 = vld [vmem:[#allocation12 + $0x64] ss:$16 sps:$4 sm:$0xff]  }
 0x3e6   :  { %2871 = vmatprep.subr.bf16.mxu1 %v3164_v18  ;;  %v3191_v18 = vld [vmem:[#allocation12 + $0x6c] ss:$16 sps:$4 sm:$0xff]  }
 0x3e9   :  { %2872 = vmatpush3.bf16.msra.mxu1 %v3165_v19  ;;  %v3186_v19 = vld [vmem:[#allocation12 + $0x60] ss:$16 sps:$4 sm:$0xff]  }
 0x3ea   :  { %2873 = vmatprep.subr.bf16.mxu1 %v3166_v20  ;;  %v3189_v20 = vld [vmem:[#allocation12 + $0x68] ss:$16 sps:$4 sm:$0xff]  }
 0x3ed   :  { %2874 = vmatpush3.bf16.msra.mxu1 %v3167_v22  ;;  %v3194_v22 = vld [vmem:[#allocation12 + $0x84] ss:$16 sps:$4 sm:$0xff]  }
 0x3ee   :  { %2151 = vmatprep.subr.bf16.mxu1 %v3173_v54 }
 0x48b   :  { %v1159_v23 = vpop.f32.mrb[12].mxu1 }
 0x48c   :  { %v2935_v24 = vpop.f32.mrb[13].mxu1 }
 0x48d   :  { %v1162_v25 = vpop.f32.mrb[14].mxu1  ;;  %v3195_v24 = vld [vmem:[#allocation12 + $0x88] ss:$16 sps:$4 sm:$0xff]  }
 0x48e   :  { %v1166_v36 = vpack.c.bf16 %v1162_v25, %v1159_v23  ;;  %v2936_v26 = vpop.f32.mrb[15].mxu1  ;;  %v3192_v23 = vld [vmem:[#allocation12 + $0x80] ss:$16 sps:$4 sm:$0xff]   ;;  %v3197_v25 = vld [vmem:[#allocation12 + $0x8c] ss:$16 sps:$4 sm:$0xff]  }
 0x48f   :  { %v3203_v26 = vld [vmem:[#allocation12 + $0xac] ss:$16 sps:$4 sm:$0xff]  }
 0x493   :  { %v1269_v27 = vpop.f32.mrb[16].mxu1 }
 0x494   :  { %v2947_v28 = vpop.f32.mrb[17].mxu1 }
 0x495   :  { %v1272_v29 = vpop.f32.mrb[18].mxu1  ;;  %v3201_v28 = vld [vmem:[#allocation12 + $0xa8] ss:$16 sps:$4 sm:$0xff]  }
 0x496   :  { %v1276_v30 = vpack.c.bf16 %v1272_v29, %v1269_v27  ;;  %v2948_v31 = vpop.f32.mrb[19].mxu1  ;;  %v3198_v27 = vld [vmem:[#allocation12 + $0xa0] ss:$16 sps:$4 sm:$0xff]   ;;  %v3206_v29 = vld [vmem:[#allocation12 + $0xc4] ss:$16 sps:$4 sm:$0xff]  }
 0x497   :  { %v3204_v31 = vld [vmem:[#allocation12 + $0xc0] ss:$16 sps:$4 sm:$0xff]  }
 0x498   :  { %1797 = vmatprep.mubr.bf16.mxu0 %v1276_v30  ;;  %v3209_v30 = vld [vmem:[#allocation12 + $0xcc] ss:$16 sps:$4 sm:$0xff]  }
 0x499   :  { %1798 = vmatmul.mubr.bf16.vlgmr.msra.gmra.mrb[28].mxu0 %v1166_v36  ;;  %v3200_v36 = vld [vmem:[#allocation12 + $0xa4] ss:$16 sps:$4 sm:$0xff]  }
 0x49a   :  { %2140 = vmatprep.mubr.bf16.mxu0 %v3491_v0  ;;  %2109 = vmatpush1.bf16.msra.mxu0 %v3168_v53 }
 0x49b   :  { %v1379_v32 = vpop.f32.mrb[20].mxu1  ;;  %2110 = vmatprep.subr.bf16.mxu0 %v3176_v7  ;;  %v3220_v7 = vld [vmem:[#allocation14 + $0x48] sm:$0xff]  }
 0x49c   :  { %v2959_v33 = vpop.f32.mrb[21].mxu1 }
 0x49d   :  { %v1382_v35 = vpop.f32.mrb[22].mxu1  ;;  %v3212_v33 = vld [vmem:[#allocation12 + $0xe4] ss:$16 sps:$4 sm:$0xff]  }
 0x49e   :  { %v1386_v38 = vpack.c.bf16 %v1382_v35, %v1379_v32  ;;  %v2960_v40 = vpop.f32.mrb[23].mxu1  ;;  %2111 = vmatpush1.bf16.msra.mxu0 %v3174_v11  ;;  %v3207_v32 = vld [vmem:[#allocation12 + $0xc8] ss:$16 sps:$4 sm:$0xff]   ;;  %v3215_v35 = vld [vmem:[#allocation12 + $0xec] ss:$16 sps:$4 sm:$0xff]  }
 0x49f   :  { %2112 = vmatprep.subr.bf16.mxu0 %v3182_v13  ;;  %v3213_v40 = vld [vmem:[#allocation12 + $0xe8] ss:$16 sps:$4 sm:$0xff]   ;;  %v3225_v13 = vld [vmem:[#allocation14 + $0xd0] sm:$0xff]  }
 0x4a0   :  { %v3223_v11 = vld [vmem:[#allocation14 + $0x88] sm:$0xff]  }
 0x4a2   :  { %2113 = vmatpush1.bf16.msra.mxu0 %v3180_v15  ;;  %v3227_v15 = vld [vmem:[#allocation14 + $0x90] sm:$0xff]  }
 0x4a3   :  { %v1489_v41 = vpop.f32.mrb[24].mxu1  ;;  %2114 = vmatprep.subr.bf16.mxu0 %v3188_v17  ;;  %v3229_v17 = vld [vmem:[#allocation14 + $0xd8] sm:$0xff]  }
 0x4a4   :  { %v2971_v42 = vpop.f32.mrb[25].mxu1 }
 0x4a5   :  { %v1492_v46 = vpop.f32.mrb[26].mxu1  ;;  %v3217_v42 = vld [vmem:[#allocation14 + $0xc0] sm:$0xff]  }
 0x4a6   :  { %v1496_v49 = vpack.c.bf16 %v1492_v46, %v1489_v41  ;;  %v2972_v51 = vpop.f32.mrb[27].mxu1  ;;  %2115 = vmatpush1.bf16.msra.mxu0 %v3186_v19  ;;  %v3216_v41 = vld [vmem:[#allocation14 + $0x40] sm:$0xff]   ;;  %v3231_v19 = vld [vmem:[#allocation14 + $0x98] sm:$0xff]  }
 0x4a7   :  { %2116 = vmatprep.subr.bf16.mxu0 %v3194_v22  ;;  %v3233_v22 = vld [vmem:[#allocation14 + $0xe0] sm:$0xff]  }
 0x4a8   :  { %1838 = vmatprep.mubr.bf16.mxu1 %v1496_v49 }
 0x4a9   :  { %1839 = vmatmul.mubr.bf16.vlgmr.msra.gmra.mrb[28].mxu1 %v1386_v38  ;;  %v3210_v38 = vld [vmem:[#allocation12 + $0xe0] ss:$16 sps:$4 sm:$0xff]  }
 0x4aa   :  { %2183 = vmatprep.mubr.bf16.mxu1 %v3491_v0  ;;  %2152 = vmatpush1.bf16.msra.mxu1 %v3171_v47 }
 0x4ab   :  { %2153 = vmatprep.subr.bf16.mxu1 %v3179_v5  ;;  %2117 = vmatpush1.bf16.msra.mxu0 %v3192_v23  ;;  %v3222_v5 = vld [vmem:[#allocation14 + $0x8] sm:$0xff]   ;;  %v3234_v23 = vld [vmem:[#allocation14 + $0x20] sm:$0xff]  }
 0x4ac   :  { %2118 = vmatprep.subr.bf16.mxu0 %v3200_v36  ;;  %v3237_v36 = vld [vmem:[#allocation14 + $0xe8] sm:$0xff]  }
 0x4ae   :  { %2154 = vmatpush1.bf16.msra.mxu1 %v3177_v12  ;;  %v3224_v12 = vld [vmem:[#allocation14 + $0x50] sm:$0xff]  }
 0x4af   :  { %2155 = vmatprep.subr.bf16.mxu1 %v3185_v14  ;;  %2119 = vmatpush1.bf16.msra.mxu0 %v3198_v27  ;;  %v3226_v14 = vld [vmem:[#allocation14 + $0x10] sm:$0xff]   ;;  %v3239_v27 = vld [vmem:[#allocation14 + $0xa8] sm:$0xff]  }
 0x4b0   :  { %2120 = vmatprep.subr.bf16.mxu0 %v3206_v29  ;;  %v3241_v29 = vld [vmem:[#allocation14 + $0xf0] sm:$0xff]  }
 0x4b2   :  { %2156 = vmatpush1.bf16.msra.mxu1 %v3183_v16  ;;  %v3228_v16 = vld [vmem:[#allocation14 + $0x58] sm:$0xff]  }
 0x4b3   :  { %2157 = vmatprep.subr.bf16.mxu1 %v3191_v18  ;;  %2121 = vmatpush1.bf16.msra.mxu0 %v3204_v31  ;;  %v3230_v18 = vld [vmem:[#allocation14 + $0x18] sm:$0xff]   ;;  %v3243_v31 = vld [vmem:[#allocation14 + $0xb0] sm:$0xff]  }
 0x4b4   :  { %2122 = vmatprep.subr.bf16.mxu0 %v3212_v33  ;;  %v3245_v33 = vld [vmem:[#allocation14 + $0xf8] sm:$0xff]  }
 0x4b6   :  { %2158 = vmatpush1.bf16.msra.mxu1 %v3189_v20  ;;  %v3232_v20 = vld [vmem:[#allocation14 + $0x60] sm:$0xff]  }
 0x4b7   :  { %2159 = vmatprep.subr.bf16.mxu1 %v3197_v25  ;;  %2123 = vmatpush1.bf16.msra.mxu0 %v3210_v38  ;;  %v3236_v25 = vld [vmem:[#allocation14 + $0x68] sm:$0xff]   ;;  %v3247_v38 = vld [vmem:[#allocation14 + $0xb8] sm:$0xff]  }
 0x4b8   :  { %2881 = vmatprep.subr.bf16.mxu0 %v3216_v41 }
 0x4ba   :  { %2160 = vmatpush1.bf16.msra.mxu1 %v3195_v24  ;;  %v3235_v24 = vld [vmem:[#allocation14 + $0xa0] sm:$0xff]  }
 0x4bb   :  { %2161 = vmatprep.subr.bf16.mxu1 %v3203_v26  ;;  %v3238_v26 = vld [vmem:[#allocation14 + $0x28] sm:$0xff]  }
 0x4be   :  { %2162 = vmatpush1.bf16.msra.mxu1 %v3201_v28  ;;  %v3240_v28 = vld [vmem:[#allocation14 + $0x70] sm:$0xff]  }
 0x4bf   :  { %2163 = vmatprep.subr.bf16.mxu1 %v3209_v30  ;;  %v3242_v30 = vld [vmem:[#allocation14 + $0x30] sm:$0xff]  }
 0x4c2   :  { %2164 = vmatpush1.bf16.msra.mxu1 %v3207_v32  ;;  %v3244_v32 = vld [vmem:[#allocation14 + $0x78] sm:$0xff]  }
 0x4c3   :  { %2165 = vmatprep.subr.bf16.mxu1 %v3215_v35  ;;  %v3246_v35 = vld [vmem:[#allocation14 + $0x38] sm:$0xff]  }
 0x4c6   :  { %2166 = vmatpush1.bf16.msra.mxu1 %v3213_v40  ;;  %v1926_v40 = vld [vmem:[%s3861_s9] sm:$0xf] }
 0x4c7   :  { %2903 = vmatprep.subr.bf16.mxu1 %v3217_v42  ;;  %v1931_v41 = vrot.slane %v1926_v40, %v3676_v39  ;;  %v1939_v42 = vrot.slane %v1926_v40, %v3682_v45 }
 0x56c   :  { %v2853_v56 = vpop.f32.mrb[28].mxu0 }
 0x56d   :  { %v2854_v57 = vpop.f32.mrb[29].mxu0 }
 0x56e   :  { %v2855_v58 = vadd.f32 %v2854_v57, %v2853_v56  ;;  %v2856_v59 = vpop.f32.mrb[30].mxu0 }
 0x56f   :  { %v2857_v44 = vpop.f32.mrb[31].mxu0 }
 0x570   :  { %v2858_v50 = vadd.f32 %v2857_v44, %v2856_v59  ;;  %v1800_v60 = vadd.f32 %v2855_v58, %v2719_v52 }
 0x572   :  { %v1803_v63 = vadd.f32 %v2858_v50, %v2719_v52 }
 0x57c   :  { %v2875_v55 = vpop.f32.mrb[28].mxu1 }
 0x57d   :  { %v2876_v0 = vpop.f32.mrb[29].mxu1 }
 0x57e   :  { %v2877_v61 = vadd.f32 %v2876_v0, %v2875_v55  ;;  %v2878_v62 = vpop.f32.mrb[30].mxu1 }
 0x57f   :  { %v2879_v34 = vpop.f32.mrb[31].mxu1 }
 0x580   :  { %v1841_v2 = vadd.f32 %v2877_v61, %v1800_v60  ;;  %v2880_v1 = vadd.f32 %v2879_v34, %v2878_v62  ;;  %v2752_v60 = vld [vmem:[%s3858_s6] ss:$0 sm:$0xff] }
 0x582   :  { %v1844_v3 = vadd.f32 %v2880_v1, %v1803_v63  ;;  %v3795_v6 = vadd.f32 %v3288_v4, %v1841_v2  ;;  %v2753_v1 = vld [vmem:[%s3859_s7] ss:$0 sm:$0xff] }
 0x584   :  { %1851 = vadd.xlane.f32.xlu0 %v3795_v6  ;;  %v3798_v9 = vadd.f32 %v3289_v8, %v1844_v3  ;;  %v1855_v10 = vmul.f32 %v3795_v6, %v3795_v6 }
 0x586   :  { %1853 = vadd.xlane.f32.xlu1 %v3798_v9  ;;  %v1856_v21 = vmul.f32 %v3798_v9, %v3798_v9 }
 0x588   :  { %1857 = vadd.xlane.f32.xlu0 %v1855_v10  ;;  %v3219_v10 = vld [vmem:[#allocation14 + $0x80] sm:$0xff]  }
 0x58a   :  { %1859 = vadd.xlane.f32.xlu1 %v1856_v21 }
 0x611   :  { %v1852_v46 = vpop.xlane.xlu0 %1851 }
 0x612   :  { %v1861_v49 = vmul.f32 0.0078125, %v1852_v46  ;;  %v1935_v46 = vrot.slane %v1926_v40, %v3678_v43 }
 0x613   :  { %v1854_v51 = vpop.xlane.xlu1 %1853 }
 0x614   :  { %v1862_v53 = vmul.f32 0.0078125, %v1854_v51  ;;  %v1865_v47 = vmul.f32 %v1861_v49, %v1861_v49  ;;  %v1869_v55 = vsub.f32 %v3795_v6, %v1861_v49  ;;  %v3218_v6 = vld [vmem:[#allocation14] sm:$0xff]   ;;  %v1943_v49 = vrot.slane %v1926_v40, %v3685_v48 }
 0x615   :  { %v1858_v37 = vpop.xlane.xlu0 %1857 }
 0x616   :  { %v1863_v54 = vmul.f32 0.0078125, %v1858_v37  ;;  %v1866_v57 = vmul.f32 %v1862_v53, %v1862_v53  ;;  %v1870_v61 = vsub.f32 %v3798_v9, %v1862_v53  ;;  %v3221_v9 = vld [vmem:[#allocation14 + $0xc8] sm:$0xff]  }
 0x617   :  { %v1860_v56 = vpop.xlane.xlu1 %1859 }
 0x618   :  { %v1867_v58 = vsub.f32 %v1863_v54, %v1865_v47  ;;  %v1864_v59 = vmul.f32 0.0078125, %v1860_v56 }
 0x61a   :  { %v1871_v44 = vadd.f32 1e-05, %v1867_v58  ;;  %v1868_v50 = vsub.f32 %v1864_v59, %v1866_v57 }
 0x61c   :  { %3280 = vrsqrt.f32 %v1871_v44  ;;  %v1872_v52 = vadd.f32 1e-05, %v1868_v50 }
 0x61e   :  { %3282 = vrsqrt.f32 %v1872_v52 }
 0x626   :  { %v3281_v0 = vpop.eup %3280 }
 0x627   :  { %v1875_v62 = vmul.f32 %v3281_v0, %v1869_v55 }
 0x628   :  { %v3283_v34 = vpop.eup %3282 }
 0x629   :  { %v1876_v63 = vmul.f32 %v3283_v34, %v1870_v61  ;;  %v1883_v2 = vmul.f32 %v2752_v60, %v1875_v62 }
 0x62b   :  { %v1884_v3 = vmul.f32 %v2752_v60, %v1876_v63  ;;  %v3813_v4 = vadd.f32 %v2753_v1, %v1883_v2 }
 0x62d   :  { %v3815_v8 = vadd.f32 %v2753_v1, %v1884_v3 }
 0x62f   :  { %v1893_v21 = vpack.c.bf16 %v3815_v8, %v3813_v4 }
 0x631   :  { %2141 = vmatmul.mubr.bf16.vlgmr.msra.gmra.mrb[32].mxu0 %v1893_v21  ;;  %2184 = vmatmul.mubr.bf16.vlgmr.msra.gmra.mrb[32].mxu1 %v1893_v21 }
 0x632   :  { %2882 = vmatpush3.bf16.msra.mxu0 %v3218_v6  ;;  %2904 = vmatpush3.bf16.msra.mxu1 %v3219_v10 }
 0x633   :  { %2883 = vmatprep.subr.bf16.mxu0 %v3220_v7  ;;  %2905 = vmatprep.subr.bf16.mxu1 %v3221_v9  ;;  %v2786_v9 = vld [vmem:[%s3863_s11] ss:$0 sm:$0xff] }
 0x636   :  { %2884 = vmatpush3.bf16.msra.mxu0 %v3222_v5  ;;  %2906 = vmatpush3.bf16.msra.mxu1 %v3223_v11 }
 0x637   :  { %2885 = vmatprep.subr.bf16.mxu0 %v3224_v12  ;;  %2907 = vmatprep.subr.bf16.mxu1 %v3225_v13 }
 0x63a   :  { %2886 = vmatpush3.bf16.msra.mxu0 %v3226_v14  ;;  %2908 = vmatpush3.bf16.msra.mxu1 %v3227_v15 }
 0x63b   :  { %2887 = vmatprep.subr.bf16.mxu0 %v3228_v16  ;;  %2909 = vmatprep.subr.bf16.mxu1 %v3229_v17 }
 0x63e   :  { %2888 = vmatpush3.bf16.msra.mxu0 %v3230_v18  ;;  %2910 = vmatpush3.bf16.msra.mxu1 %v3231_v19 }
 0x63f   :  { %2889 = vmatprep.subr.bf16.mxu0 %v3232_v20  ;;  %2911 = vmatprep.subr.bf16.mxu1 %v3233_v22 }
 0x642   :  { %2890 = vmatpush3.bf16.msra.mxu0 %v3234_v23  ;;  %2912 = vmatpush3.bf16.msra.mxu1 %v3235_v24 }
 0x643   :  { %2891 = vmatprep.subr.bf16.mxu0 %v3236_v25  ;;  %2913 = vmatprep.subr.bf16.mxu1 %v3237_v36 }
 0x646   :  { %2892 = vmatpush3.bf16.msra.mxu0 %v3238_v26  ;;  %2914 = vmatpush3.bf16.msra.mxu1 %v3239_v27 }
 0x647   :  { %2893 = vmatprep.subr.bf16.mxu0 %v3240_v28  ;;  %2915 = vmatprep.subr.bf16.mxu1 %v3241_v29 }
 0x64a   :  { %2894 = vmatpush3.bf16.msra.mxu0 %v3242_v30  ;;  %2916 = vmatpush3.bf16.msra.mxu1 %v3243_v31 }
 0x64b   :  { %2895 = vmatprep.subr.bf16.mxu0 %v3244_v32  ;;  %2917 = vmatprep.subr.bf16.mxu1 %v3245_v33 }
 0x64e   :  { %2896 = vmatpush3.bf16.msra.mxu0 %v3246_v35  ;;  %2918 = vmatpush3.bf16.msra.mxu1 %v3247_v38 }
 0x704   :  { %v2142_v51 = vpop.f32.mrb[32].mxu0  ;;  %v2185_v53 = vpop.f32.mrb[32].mxu1 }
 0x705   :  { %v2143_v37 = vadd.f32 %v2142_v51, %v1931_v41  ;;  %v2186_v47 = vadd.f32 %v2185_v53, %v1939_v42  ;;  %v2144_v54 = vpop.f32.mrb[33].mxu0  ;;  %v2187_v56 = vpop.f32.mrb[33].mxu1  ;;  %v2819_v53 = vld [vmem:[%s3864_s12] ss:$0 sm:$0xff] }
 0x706   :  { %v2145_v57 = vadd.f32 %v2144_v54, %v1935_v46  ;;  %v2188_v58 = vadd.f32 %v2187_v56, %v1943_v49  ;;  %v2146_v59 = vpop.f32.mrb[34].mxu0  ;;  %v2189_v44 = vpop.f32.mrb[34].mxu1  ;;  %v2820_v56 = vld [vmem:[%s3865_s13] ss:$0 sm:$0xff] }
 0x707   :  { %v2147_v50 = vadd.f32 %v2146_v59, %v1931_v41  ;;  %v2190_v52 = vadd.f32 %v2189_v44, %v1939_v42  ;;  %v2148_v55 = vpop.f32.mrb[35].mxu0  ;;  %v2191_v39 = vpop.f32.mrb[35].mxu1  ;;  %v2194_v60 = vmax.f32 %v2143_v37, 0.0  ;;  %v2196_v43 = vmax.f32 %v2186_v47, 0.0 }
 0x708   :  { %v2149_v0 = vadd.f32 %v2148_v55, %v1935_v46  ;;  %v2192_v45 = vadd.f32 %v2191_v39, %v1943_v49  ;;  %v2195_v62 = vmax.f32 %v2145_v57, 0.0  ;;  %v2197_v34 = vmax.f32 %v2188_v58, 0.0 }
 0x709   :  { %v2198_v61 = vmax.f32 %v2147_v50, 0.0  ;;  %v2200_v48 = vmax.f32 %v2190_v52, 0.0 }
 0x70a   :  { %v2199_v63 = vmax.f32 %v2149_v0, 0.0  ;;  %v2201_v2 = vmax.f32 %v2192_v45, 0.0 }
 0x70b   :  { %v2202_v1 = vpack.c.bf16 %v2198_v61, %v2194_v60  ;;  %v2204_v3 = vpack.c.bf16 %v2200_v48, %v2196_v43 }
 0x70c   :  { %v2203_v6 = vpack.c.bf16 %v2199_v63, %v2195_v62  ;;  %v2205_v10 = vpack.c.bf16 %v2201_v2, %v2197_v34 }
 0x70e   :  { %2501 = vmatprep.mubr.bf16.mxu0 %v2203_v6  ;;  %2542 = vmatprep.mubr.bf16.mxu1 %v2205_v10 }
 0x70f   :  { %2502 = vmatmul.mubr.bf16.vlgmr.msra.gmra.mrb[36].mxu0 %v2202_v1  ;;  %2543 = vmatmul.mubr.bf16.vlgmr.msra.gmra.mrb[36].mxu1 %v2204_v3 }
 0x7e2   :  { %v2897_v21 = vpop.f32.mrb[36].mxu0  ;;  %v2919_v7 = vpop.f32.mrb[36].mxu1 }
 0x7e3   :  { %v2898_v5 = vpop.f32.mrb[37].mxu0  ;;  %v2920_v11 = vpop.f32.mrb[37].mxu1 }
 0x7e4   :  { %v2899_v12 = vadd.f32 %v2898_v5, %v2897_v21  ;;  %v2921_v13 = vadd.f32 %v2920_v11, %v2919_v7  ;;  %v2900_v14 = vpop.f32.mrb[38].mxu0  ;;  %v2922_v15 = vpop.f32.mrb[38].mxu1 }
 0x7e5   :  { %v2901_v16 = vpop.f32.mrb[39].mxu0  ;;  %v2923_v17 = vpop.f32.mrb[39].mxu1 }
 0x7e6   :  { %v2504_v18 = vadd.f32 %v2899_v12, %v2786_v9  ;;  %v2902_v19 = vadd.f32 %v2901_v16, %v2900_v14  ;;  %v2924_v20 = vadd.f32 %v2923_v17, %v2922_v15 }
 0x7e8   :  { %v2545_v22 = vadd.f32 %v2921_v13, %v2504_v18  ;;  %v2507_v23 = vadd.f32 %v2902_v19, %v2786_v9 }
 0x7ea   :  { %v2548_v24 = vadd.f32 %v2924_v20, %v2507_v23  ;;  %v2551_v25 = vadd.f32 %v2545_v22, %v3813_v4 }
 0x7ec   :  { %2555 = vadd.xlane.f32.xlu0 %v2551_v25  ;;  %v2552_v36 = vadd.f32 %v2548_v24, %v3815_v8  ;;  %v2559_v26 = vmul.f32 %v2551_v25, %v2551_v25 }
 0x7ee   :  { %2557 = vadd.xlane.f32.xlu1 %v2552_v36  ;;  %v2560_v27 = vmul.f32 %v2552_v36, %v2552_v36 }
 0x7f0   :  { %2561 = vadd.xlane.f32.xlu0 %v2559_v26 }
 0x7f2   :  { %2563 = vadd.xlane.f32.xlu1 %v2560_v27 }
 0x879   :  { %v2556_v28 = vpop.xlane.xlu0 %2555 }
 0x87a   :  { %v2565_v29 = vmul.f32 0.0078125, %v2556_v28 }
 0x87b   :  { %v2558_v30 = vpop.xlane.xlu1 %2557 }
 0x87c   :  { %v2566_v31 = vmul.f32 0.0078125, %v2558_v30  ;;  %v2569_v33 = vmul.f32 %v2565_v29, %v2565_v29  ;;  %v2573_v49 = vsub.f32 %v2551_v25, %v2565_v29 }
 0x87d   :  { %v2562_v32 = vpop.xlane.xlu0 %2561 }
 0x87e   :  { %v2567_v35 = vmul.f32 0.0078125, %v2562_v32  ;;  %v2570_v40 = vmul.f32 %v2566_v31, %v2566_v31  ;;  %v2574_v37 = vsub.f32 %v2552_v36, %v2566_v31 }
 0x87f   :  { %v2564_v38 = vpop.xlane.xlu1 %2563 }
 0x880   :  { %v2571_v41 = vsub.f32 %v2567_v35, %v2569_v33  ;;  %v2568_v42 = vmul.f32 0.0078125, %v2564_v38 }
 0x882   :  { %v2575_v4 = vadd.f32 1e-05, %v2571_v41  ;;  %v2572_v46 = vsub.f32 %v2568_v42, %v2570_v40 }
 0x884   :  { %3284 = vrsqrt.f32 %v2575_v4  ;;  %v2576_v8 = vadd.f32 1e-05, %v2572_v46 }
 0x886   :  { %3286 = vrsqrt.f32 %v2576_v8 }
 0x88e   :  { %v3285_v51 = vpop.eup %3284 }
 0x88f   :  { %v2579_v47 = vmul.f32 %v3285_v51, %v2573_v49 }
 0x890   :  { %v3287_v54 = vpop.eup %3286 }
 0x891   :  { %v2580_v57 = vmul.f32 %v3287_v54, %v2574_v37  ;;  %v2587_v58 = vmul.f32 %v2819_v53, %v2579_v47 }
 0x893   :  { %v2588_v59 = vmul.f32 %v2819_v53, %v2580_v57  ;;  %v2595_v44 = vadd.f32 %v2820_v56, %v2587_v58 }
 0x895   :  { %v2596_v50 = vadd.f32 %v2820_v56, %v2588_v59  ;;  %2597 = vst [vmem:[#allocation15] sm:$0xff] %v2595_v44 }
 0x897   :  { %2598 = vst [vmem:[#allocation15 + $0x8] sm:$0xff] %v2596_v50 }
 0x898   :  { %3455 = shalt.err (!%p3452_p4)
}
 0x899   :  { %s3456_s13 = scalar_lea.hbm %s3866_s14, 256 }
 0x89a   :  { %p3457_p5 = scmp.ne.s32.totalorder %s3866_s14, %s3456_s13  ;;  %p3460_p6 = scmp.lt.u32.totalorder %s3456_s13, %s3866_s14 }
 0x89c   :  { %p3462_p7 = pnand %p3460_p6, %p3457_p5 }
 0x89e   :  { %3465 = shalt.err (!%p3462_p7)
}
 0x89f   :  { %2610 = dma.vmem_to_hbm [thread:$0]  %s2605_s0, 256, %s3866_s14, [#allocation5], %s3478_s25, %s3478_s25, %s3479_s26  }
 0x8a0   :  { %3474 = dma.done.wait [#allocation5], 256  }
 0x8a1   :  { %3475 = vsyncadd [#allocation5], 4294967040 }
 0x8a2   :  { %2614 = vsyncpa [#allocation4], 1 }
 0x8a3   :  { %2615 = vsyncpa [#allocation7], 1 }
 0x8a4   :  { %2616 = vsyncpa [#allocation10], 1 }
 0x8a5   :  { %2617 = vsyncpa [#allocation13], 1 }
 0x8a6   :  { %2618 = vsyncpa [#allocation5], 1 }

</bundles_post_ra>
